<compile_context>
chip_gen: v5e
topology: v5e:2x2
jax: 0.10.0
libtpu: 0.0.40
codegen_flags: <defaults>
</compile_context>

<pallas_src>
import jax
import jax.numpy as jnp
from jax import lax
from jax.experimental import pallas as pl
from jax.experimental.pallas import tpu as pltpu

BN_EPS = 1e-5       # nn.BatchNorm1d default eps
NORM_EPS = 1e-12    # F.normalize default eps

# rows of the packed per-feature-vector array (built once in init_params)
ROW_NET_B, ROW_PROJ_G, ROW_PROJ_BETA, ROW_PROJ_B2, \
    ROW_PRED_G, ROW_PRED_BETA, ROW_PRED_B2 = range(7)


def _vmem_specs(n):
    return [pl.BlockSpec(memory_space=pltpu.MemorySpace.VMEM) for _ in range(n)]


# ----------------------------- fused kernel --------------------------------- #

def byol_fused_kernel(
    x_ref, n1_ref, n2_ref,                       # (B, IMG) input + per-view noise
    net_w_ref,                                   # base-net hidden layer (-2) weight
    pw1_ref, pw2_ref,                            # projector MLP weights
    qw1_ref, qw2_ref,                            # online predictor MLP weights
    vecs_ref,                                    # (8, PH) packed biases / BN gamma / beta
    loss_ref,                                    # (1, 1) scalar loss out
):
    b = x_ref.shape[0]                # rows per view (static)
    nh = net_w_ref.shape[1]           # net hidden width
    ps = pw2_ref.shape[1]             # projection size

    # unpack the coalesced per-feature vectors (one DMA, static lane-aligned slices)
    net_b     = vecs_ref[ROW_NET_B:ROW_NET_B + 1, 0:nh]
    proj_g    = vecs_ref[ROW_PROJ_G:ROW_PROJ_G + 1, :]
    proj_beta = vecs_ref[ROW_PROJ_BETA:ROW_PROJ_BETA + 1, :]
    proj_b2   = vecs_ref[ROW_PROJ_B2:ROW_PROJ_B2 + 1, 0:ps]
    pred_g    = vecs_ref[ROW_PRED_G:ROW_PRED_G + 1, :]
    pred_beta = vecs_ref[ROW_PRED_BETA:ROW_PRED_BETA + 1, :]
    pred_b2   = vecs_ref[ROW_PRED_B2:ROW_PRED_B2 + 1, 0:ps]

    # --- augmentation (GaussianBlur): x + N(0,p), clamp(min=0); both views built
    #     in-kernel so x is streamed from HBM exactly once, then stacked (M = 2B) ---
    x = x_ref[...]
    aug = jnp.concatenate(
        [jnp.maximum(x + n1_ref[...], 0.0),
         jnp.maximum(x + n2_ref[...], 0.0)], axis=0).astype(jnp.bfloat16)

    # --- base net hidden layer (-2): ReLU(Linear) -> flattened representation ---
    rep = jnp.maximum(
        jnp.dot(aug, net_w_ref[...], preferred_element_type=jnp.float32) + net_b, 0.0)

    def bn_relu(h, g, beta):
        # BatchNorm1d training mode (biased batch variance), stats per view.
        # gamma folded into the rsqrt -> 1 mul + 1 add per activation element.
        mean = jnp.mean(h, axis=0, keepdims=True)
        var = jnp.mean(jnp.square(h - mean), axis=0, keepdims=True)
        scl = g * lax.rsqrt(var + BN_EPS)
        shift = beta - mean * scl
        return jnp.maximum(h * scl + shift, 0.0)

    def mlp(x2, w1, g, beta, w2, b2):
        # Linear (bias dropped: BN mean-subtraction cancels it exactly)
        # -> BatchNorm1d(train stats, per view) -> ReLU -> Linear
        h = jnp.dot(x2, w1[...], preferred_element_type=jnp.float32)
        # per-view BN entirely in vregs; 8-row halves are sublane-aligned so the
        # slices and the re-concat are layout-free (no VMEM scratch round-trip)
        h = jnp.concatenate([bn_relu(h[:b], g, beta),
                             bn_relu(h[b:], g, beta)], axis=0)
        h = h.astype(jnp.bfloat16)     # only consumer is the bf16 MXU feed below
        return jnp.dot(h, w2[...], preferred_element_type=jnp.float32) + b2

    # --- online projector (target projector is a deepcopy -> identical output, reused) ---
    proj = mlp(rep.astype(jnp.bfloat16), pw1_ref, proj_g, proj_beta, pw2_ref, proj_b2)
    # --- online predictor ---
    pred = mlp(proj.astype(jnp.bfloat16), qw1_ref, pred_g, pred_beta, qw2_ref, pred_b2)

    # --- symmetric BYOL loss: 2 - 2*cos(x, y) per sample (F.normalize eps = 1e-12) ---
    def cos_loss(a, t):
        inv_a = lax.rsqrt(jnp.maximum(jnp.sum(a * a, axis=-1, keepdims=True),
                                      NORM_EPS * NORM_EPS))
        inv_t = lax.rsqrt(jnp.maximum(jnp.sum(t * t, axis=-1, keepdims=True),
                                      NORM_EPS * NORM_EPS))
        return 2.0 - 2.0 * jnp.sum(a * t, axis=-1, keepdims=True) * inv_a * inv_t

    per_sample = cos_loss(pred[:b], proj[b:]) + cos_loss(pred[b:], proj[:b])   # (B, 1)
    # final mean computed in-kernel -> single (1,1) output, no wrapper-side jnp.mean
    loss_ref[...] = jnp.mean(per_sample, axis=0, keepdims=True)


# ------------------------------- wrapper ------------------------------------ #

def byol_forward(x, noise1, noise2, p):
    """Full BYOL forward: returns scalar loss (loss_one + loss_two).mean()."""
    loss = pl.pallas_call(
        byol_fused_kernel,
        out_shape=jax.ShapeDtypeStruct((1, 1), jnp.float32),
        in_specs=_vmem_specs(9),
        out_specs=pl.BlockSpec(memory_space=pltpu.MemorySpace.VMEM),
    )(x, noise1, noise2,
      p["net_w"], p["proj_w1"], p["proj_w2"], p["pred_w1"], p["pred_w2"],
      p["vecs"])
    return loss[0, 0]


# ----------------------------- param init ----------------------------------- #

def init_params(key, image_size, net_hidden, proj_hidden, proj_size):
    assert net_hidden <= proj_hidden and proj_size <= proj_hidden
    ks = jax.random.split(key, 8)
    scale = 0.05

    def lin_w(k, din, dout):
        # matmul weights stored transposed vs. PyTorch ((in, out)) and in bf16 for the MXU
        return (scale * jax.random.normal(k, (din, dout), jnp.float32)).astype(jnp.bfloat16)

    def padded_row(v):
        row = jnp.zeros((proj_hidden,), jnp.float32)
        return row.at[: v.shape[0]].set(v)

    ones_ph = jnp.ones((proj_hidden,), jnp.float32)
    zeros_ph = jnp.zeros((proj_hidden,), jnp.float32)

    # pack all small per-feature vectors into one (8, proj_hidden) array (single DMA):
    # [net_b, proj_gamma, proj_beta, proj_b2, pred_gamma, pred_beta, pred_b2, pad]
    vecs = jnp.stack([
        padded_row(scale * jax.random.normal(ks[1], (net_hidden,), jnp.float32)),
        ones_ph,                                                        # proj BN gamma
        zeros_ph,                                                       # proj BN beta
        padded_row(scale * jax.random.normal(ks[5], (proj_size,), jnp.float32)),
        ones_ph,                                                        # pred BN gamma
        zeros_ph,                                                       # pred BN beta
        padded_row(jnp.zeros((proj_size,), jnp.float32)),               # pred_b2
        zeros_ph,                                                       # padding row
    ], axis=0)

    return {
        # base net: Linear(image_size, net_hidden) -> ReLU (hooked layer -2)
        "net_w": lin_w(ks[0], image_size, net_hidden),
        # projector MLP(net_hidden, proj_size, proj_hidden)  (first Linear bias dropped:
        # it cancels exactly under the following BatchNorm's mean subtraction)
        "proj_w1": lin_w(ks[2], net_hidden, proj_hidden),
        "proj_w2": lin_w(ks[4], proj_hidden, proj_size),
        # online predictor MLP(proj_size, proj_size, proj_hidden)
        "pred_w1": lin_w(ks[6], proj_size, proj_hidden),
        "pred_w2": lin_w(ks[7], proj_hidden, proj_size),
        # packed small vectors
        "vecs": vecs,
    }


# --------------------------------- main -------------------------------------- #

if __name__ == "__main__":
    B = 8               # batch_size per view (>1 required due to BatchNorm1d)
    IMAGE_SIZE = 128    # BYOL.__init__ forwards torch.randn(batch_size, image_size)
    NET_HIDDEN = 128    # dim of the base net's hidden layer (-2) output
    PROJ_HIDDEN = 256   # projection_hidden_size (4096 in the module; lane-aligned small here)
    PROJ_SIZE = 128     # projection_size (256 in the module; lane-aligned small here)
    AUG_P = 0.1         # GaussianBlur intensity (std of added noise)

    key = jax.random.PRNGKey(0)
    k_x, k_n1, k_n2, k_p = jax.random.split(key, 4)

    x = jax.random.normal(k_x, (B, IMAGE_SIZE), jnp.float32)
    noise1 = AUG_P * jax.random.normal(k_n1, (B, IMAGE_SIZE), jnp.float32)
    noise2 = AUG_P * jax.random.normal(k_n2, (B, IMAGE_SIZE), jnp.float32)

    params = init_params(k_p, IMAGE_SIZE, NET_HIDDEN, PROJ_HIDDEN, PROJ_SIZE)

    loss = jax.jit(byol_forward)(x, noise1, noise2, params)
    jax.block_until_ready(loss)
    assert loss.shape == () and jnp.isfinite(loss)
    print("KERNEL_OK")
</pallas_src>

<mosaic_0001>
module attributes {stable_mosaic.version = 11 : i64} {
  func.func @byol_fused_kernel(%arg0: memref<8x128xf32, #tpu.memory_space<vmem>>, %arg1: memref<8x128xf32, #tpu.memory_space<vmem>>, %arg2: memref<8x128xf32, #tpu.memory_space<vmem>>, %arg3: memref<128x128xbf16, #tpu.memory_space<vmem>>, %arg4: memref<128x256xbf16, #tpu.memory_space<vmem>>, %arg5: memref<256x128xbf16, #tpu.memory_space<vmem>>, %arg6: memref<128x256xbf16, #tpu.memory_space<vmem>>, %arg7: memref<256x128xbf16, #tpu.memory_space<vmem>>, %arg8: memref<8x256xf32, #tpu.memory_space<vmem>>, %arg9: memref<1x1xf32, #tpu.memory_space<vmem>>) attributes {dimension_semantics = [], scalar_prefetch = 0 : i64, scratch_operands = 0 : i64, tpu.core_type = #tpu.core_type<tc>} {
    %c0 = arith.constant 0 : index
    %c0_0 = arith.constant 0 : index
    %0 = vector.load %arg8[%c0, %c0_0] : memref<8x256xf32, #tpu.memory_space<vmem>>, vector<1x128xf32>
    %c1 = arith.constant 1 : index
    %c0_1 = arith.constant 0 : index
    %1 = vector.load %arg8[%c1, %c0_1] : memref<8x256xf32, #tpu.memory_space<vmem>>, vector<1x256xf32>
    %c2 = arith.constant 2 : index
    %c0_2 = arith.constant 0 : index
    %2 = vector.load %arg8[%c2, %c0_2] : memref<8x256xf32, #tpu.memory_space<vmem>>, vector<1x256xf32>
    %c3 = arith.constant 3 : index
    %c0_3 = arith.constant 0 : index
    %3 = vector.load %arg8[%c3, %c0_3] : memref<8x256xf32, #tpu.memory_space<vmem>>, vector<1x128xf32>
    %c4 = arith.constant 4 : index
    %c0_4 = arith.constant 0 : index
    %4 = vector.load %arg8[%c4, %c0_4] : memref<8x256xf32, #tpu.memory_space<vmem>>, vector<1x256xf32>
    %c5 = arith.constant 5 : index
    %c0_5 = arith.constant 0 : index
    %5 = vector.load %arg8[%c5, %c0_5] : memref<8x256xf32, #tpu.memory_space<vmem>>, vector<1x256xf32>
    %c6 = arith.constant 6 : index
    %c0_6 = arith.constant 0 : index
    %6 = vector.load %arg8[%c6, %c0_6] : memref<8x256xf32, #tpu.memory_space<vmem>>, vector<1x128xf32>
    %c0_7 = arith.constant 0 : index
    %c0_8 = arith.constant 0 : index
    %7 = vector.load %arg0[%c0_7, %c0_8] : memref<8x128xf32, #tpu.memory_space<vmem>>, vector<8x128xf32>
    %c0_9 = arith.constant 0 : index
    %c0_10 = arith.constant 0 : index
    %8 = vector.load %arg1[%c0_9, %c0_10] : memref<8x128xf32, #tpu.memory_space<vmem>>, vector<8x128xf32>
    %9 = arith.addf %7, %8 : vector<8x128xf32>
    %cst = arith.constant 0.000000e+00 : f32
    %10 = vector.broadcast %cst : f32 to vector<8x128xf32>
    %11 = arith.maximumf %9, %10 : vector<8x128xf32>
    %c0_11 = arith.constant 0 : index
    %c0_12 = arith.constant 0 : index
    %12 = vector.load %arg2[%c0_11, %c0_12] : memref<8x128xf32, #tpu.memory_space<vmem>>, vector<8x128xf32>
    %13 = arith.addf %7, %12 : vector<8x128xf32>
    %cst_13 = arith.constant 0.000000e+00 : f32
    %14 = vector.broadcast %cst_13 : f32 to vector<8x128xf32>
    %15 = arith.maximumf %13, %14 : vector<8x128xf32>
    %16 = tpu.concatenate %11, %15 in 0 : vector<8x128xf32>, vector<8x128xf32> -> vector<16x128xf32>
    %17 = arith.truncf %16 : vector<16x128xf32> to vector<16x128xbf16>
    %c0_14 = arith.constant 0 : index
    %c0_15 = arith.constant 0 : index
    %18 = vector.load %arg3[%c0_14, %c0_15] : memref<128x128xbf16, #tpu.memory_space<vmem>>, vector<128x128xbf16>
    %cst_16 = arith.constant dense<0.000000e+00> : vector<16x128xf32>
    %19 = tpu.matmul %17, %18, %cst_16 {dimension_numbers = #tpu.dot_dimension_numbers<[1], [0], [0], [1], [0, 0, 1, 1], [], []>} : vector<16x128xbf16>, vector<128x128xbf16>, vector<16x128xf32> -> vector<16x128xf32>
    %20 = vector.broadcast %0 : vector<1x128xf32> to vector<16x128xf32>
    %21 = arith.addf %19, %20 : vector<16x128xf32>
    %cst_17 = arith.constant 0.000000e+00 : f32
    %22 = vector.broadcast %cst_17 : f32 to vector<16x128xf32>
    %23 = arith.maximumf %21, %22 : vector<16x128xf32>
    %24 = arith.truncf %23 : vector<16x128xf32> to vector<16x128xbf16>
    %c0_18 = arith.constant 0 : index
    %c0_19 = arith.constant 0 : index
    %25 = vector.load %arg4[%c0_18, %c0_19] : memref<128x256xbf16, #tpu.memory_space<vmem>>, vector<128x256xbf16>
    %cst_20 = arith.constant dense<0.000000e+00> : vector<16x256xf32>
    %26 = tpu.matmul %24, %25, %cst_20 {dimension_numbers = #tpu.dot_dimension_numbers<[1], [0], [0], [1], [0, 0, 1, 1], [], []>} : vector<16x128xbf16>, vector<128x256xbf16>, vector<16x256xf32> -> vector<16x256xf32>
    %27 = vector.extract_strided_slice %26 {offsets = [0, 0], sizes = [8, 256], strides = [1, 1]} : vector<16x256xf32> to vector<8x256xf32>
    %cst_21 = arith.constant dense<0.000000e+00> : vector<256xf32>
    %28 = vector.multi_reduction <add>, %27, %cst_21 [0] : vector<8x256xf32> to vector<256xf32>
    %29 = vector.shape_cast %28 : vector<256xf32> to vector<1x256xf32>
    %cst_22 = arith.constant 8.000000e+00 : f32
    %30 = vector.broadcast %cst_22 : f32 to vector<1x256xf32>
    %31 = arith.divf %29, %30 : vector<1x256xf32>
    %32 = vector.broadcast %31 : vector<1x256xf32> to vector<8x256xf32>
    %33 = arith.subf %27, %32 : vector<8x256xf32>
    %34 = arith.mulf %33, %33 : vector<8x256xf32>
    %cst_23 = arith.constant dense<0.000000e+00> : vector<256xf32>
    %35 = vector.multi_reduction <add>, %34, %cst_23 [0] : vector<8x256xf32> to vector<256xf32>
    %36 = vector.shape_cast %35 : vector<256xf32> to vector<1x256xf32>
    %cst_24 = arith.constant 8.000000e+00 : f32
    %37 = vector.broadcast %cst_24 : f32 to vector<1x256xf32>
    %38 = arith.divf %36, %37 : vector<1x256xf32>
    %cst_25 = arith.constant 9.99999974E-6 : f32
    %39 = vector.broadcast %cst_25 : f32 to vector<1x256xf32>
    %40 = arith.addf %38, %39 : vector<1x256xf32>
    %41 = math.rsqrt %40 : vector<1x256xf32>
    %42 = arith.mulf %1, %41 : vector<1x256xf32>
    %43 = arith.mulf %31, %42 : vector<1x256xf32>
    %44 = arith.subf %2, %43 : vector<1x256xf32>
    %45 = vector.broadcast %42 : vector<1x256xf32> to vector<8x256xf32>
    %46 = arith.mulf %27, %45 : vector<8x256xf32>
    %47 = vector.broadcast %44 : vector<1x256xf32> to vector<8x256xf32>
    %48 = arith.addf %46, %47 : vector<8x256xf32>
    %cst_26 = arith.constant 0.000000e+00 : f32
    %49 = vector.broadcast %cst_26 : f32 to vector<8x256xf32>
    %50 = arith.maximumf %48, %49 : vector<8x256xf32>
    %51 = vector.extract_strided_slice %26 {offsets = [8, 0], sizes = [8, 256], strides = [1, 1]} : vector<16x256xf32> to vector<8x256xf32>
    %cst_27 = arith.constant dense<0.000000e+00> : vector<256xf32>
    %52 = vector.multi_reduction <add>, %51, %cst_27 [0] : vector<8x256xf32> to vector<256xf32>
    %53 = vector.shape_cast %52 : vector<256xf32> to vector<1x256xf32>
    %cst_28 = arith.constant 8.000000e+00 : f32
    %54 = vector.broadcast %cst_28 : f32 to vector<1x256xf32>
    %55 = arith.divf %53, %54 : vector<1x256xf32>
    %56 = vector.broadcast %55 : vector<1x256xf32> to vector<8x256xf32>
    %57 = arith.subf %51, %56 : vector<8x256xf32>
    %58 = arith.mulf %57, %57 : vector<8x256xf32>
    %cst_29 = arith.constant dense<0.000000e+00> : vector<256xf32>
    %59 = vector.multi_reduction <add>, %58, %cst_29 [0] : vector<8x256xf32> to vector<256xf32>
    %60 = vector.shape_cast %59 : vector<256xf32> to vector<1x256xf32>
    %cst_30 = arith.constant 8.000000e+00 : f32
    %61 = vector.broadcast %cst_30 : f32 to vector<1x256xf32>
    %62 = arith.divf %60, %61 : vector<1x256xf32>
    %cst_31 = arith.constant 9.99999974E-6 : f32
    %63 = vector.broadcast %cst_31 : f32 to vector<1x256xf32>
    %64 = arith.addf %62, %63 : vector<1x256xf32>
    %65 = math.rsqrt %64 : vector<1x256xf32>
    %66 = arith.mulf %1, %65 : vector<1x256xf32>
    %67 = arith.mulf %55, %66 : vector<1x256xf32>
    %68 = arith.subf %2, %67 : vector<1x256xf32>
    %69 = vector.broadcast %66 : vector<1x256xf32> to vector<8x256xf32>
    %70 = arith.mulf %51, %69 : vector<8x256xf32>
    %71 = vector.broadcast %68 : vector<1x256xf32> to vector<8x256xf32>
    %72 = arith.addf %70, %71 : vector<8x256xf32>
    %cst_32 = arith.constant 0.000000e+00 : f32
    %73 = vector.broadcast %cst_32 : f32 to vector<8x256xf32>
    %74 = arith.maximumf %72, %73 : vector<8x256xf32>
    %75 = tpu.concatenate %50, %74 in 0 : vector<8x256xf32>, vector<8x256xf32> -> vector<16x256xf32>
    %76 = arith.truncf %75 : vector<16x256xf32> to vector<16x256xbf16>
    %c0_33 = arith.constant 0 : index
    %c0_34 = arith.constant 0 : index
    %77 = vector.load %arg5[%c0_33, %c0_34] : memref<256x128xbf16, #tpu.memory_space<vmem>>, vector<256x128xbf16>
    %cst_35 = arith.constant dense<0.000000e+00> : vector<16x128xf32>
    %78 = tpu.matmul %76, %77, %cst_35 {dimension_numbers = #tpu.dot_dimension_numbers<[1], [0], [0], [1], [0, 0, 1, 1], [], []>} : vector<16x256xbf16>, vector<256x128xbf16>, vector<16x128xf32> -> vector<16x128xf32>
    %79 = vector.broadcast %3 : vector<1x128xf32> to vector<16x128xf32>
    %80 = arith.addf %78, %79 : vector<16x128xf32>
    %81 = arith.truncf %80 : vector<16x128xf32> to vector<16x128xbf16>
    %c0_36 = arith.constant 0 : index
    %c0_37 = arith.constant 0 : index
    %82 = vector.load %arg6[%c0_36, %c0_37] : memref<128x256xbf16, #tpu.memory_space<vmem>>, vector<128x256xbf16>
    %cst_38 = arith.constant dense<0.000000e+00> : vector<16x256xf32>
    %83 = tpu.matmul %81, %82, %cst_38 {dimension_numbers = #tpu.dot_dimension_numbers<[1], [0], [0], [1], [0, 0, 1, 1], [], []>} : vector<16x128xbf16>, vector<128x256xbf16>, vector<16x256xf32> -> vector<16x256xf32>
    %84 = vector.extract_strided_slice %83 {offsets = [0, 0], sizes = [8, 256], strides = [1, 1]} : vector<16x256xf32> to vector<8x256xf32>
    %cst_39 = arith.constant dense<0.000000e+00> : vector<256xf32>
    %85 = vector.multi_reduction <add>, %84, %cst_39 [0] : vector<8x256xf32> to vector<256xf32>
    %86 = vector.shape_cast %85 : vector<256xf32> to vector<1x256xf32>
    %cst_40 = arith.constant 8.000000e+00 : f32
    %87 = vector.broadcast %cst_40 : f32 to vector<1x256xf32>
    %88 = arith.divf %86, %87 : vector<1x256xf32>
    %89 = vector.broadcast %88 : vector<1x256xf32> to vector<8x256xf32>
    %90 = arith.subf %84, %89 : vector<8x256xf32>
    %91 = arith.mulf %90, %90 : vector<8x256xf32>
    %cst_41 = arith.constant dense<0.000000e+00> : vector<256xf32>
    %92 = vector.multi_reduction <add>, %91, %cst_41 [0] : vector<8x256xf32> to vector<256xf32>
    %93 = vector.shape_cast %92 : vector<256xf32> to vector<1x256xf32>
    %cst_42 = arith.constant 8.000000e+00 : f32
    %94 = vector.broadcast %cst_42 : f32 to vector<1x256xf32>
    %95 = arith.divf %93, %94 : vector<1x256xf32>
    %cst_43 = arith.constant 9.99999974E-6 : f32
    %96 = vector.broadcast %cst_43 : f32 to vector<1x256xf32>
    %97 = arith.addf %95, %96 : vector<1x256xf32>
    %98 = math.rsqrt %97 : vector<1x256xf32>
    %99 = arith.mulf %4, %98 : vector<1x256xf32>
    %100 = arith.mulf %88, %99 : vector<1x256xf32>
    %101 = arith.subf %5, %100 : vector<1x256xf32>
    %102 = vector.broadcast %99 : vector<1x256xf32> to vector<8x256xf32>
    %103 = arith.mulf %84, %102 : vector<8x256xf32>
    %104 = vector.broadcast %101 : vector<1x256xf32> to vector<8x256xf32>
    %105 = arith.addf %103, %104 : vector<8x256xf32>
    %cst_44 = arith.constant 0.000000e+00 : f32
    %106 = vector.broadcast %cst_44 : f32 to vector<8x256xf32>
    %107 = arith.maximumf %105, %106 : vector<8x256xf32>
    %108 = vector.extract_strided_slice %83 {offsets = [8, 0], sizes = [8, 256], strides = [1, 1]} : vector<16x256xf32> to vector<8x256xf32>
    %cst_45 = arith.constant dense<0.000000e+00> : vector<256xf32>
    %109 = vector.multi_reduction <add>, %108, %cst_45 [0] : vector<8x256xf32> to vector<256xf32>
    %110 = vector.shape_cast %109 : vector<256xf32> to vector<1x256xf32>
    %cst_46 = arith.constant 8.000000e+00 : f32
    %111 = vector.broadcast %cst_46 : f32 to vector<1x256xf32>
    %112 = arith.divf %110, %111 : vector<1x256xf32>
    %113 = vector.broadcast %112 : vector<1x256xf32> to vector<8x256xf32>
    %114 = arith.subf %108, %113 : vector<8x256xf32>
    %115 = arith.mulf %114, %114 : vector<8x256xf32>
    %cst_47 = arith.constant dense<0.000000e+00> : vector<256xf32>
    %116 = vector.multi_reduction <add>, %115, %cst_47 [0] : vector<8x256xf32> to vector<256xf32>
    %117 = vector.shape_cast %116 : vector<256xf32> to vector<1x256xf32>
    %cst_48 = arith.constant 8.000000e+00 : f32
    %118 = vector.broadcast %cst_48 : f32 to vector<1x256xf32>
    %119 = arith.divf %117, %118 : vector<1x256xf32>
    %cst_49 = arith.constant 9.99999974E-6 : f32
    %120 = vector.broadcast %cst_49 : f32 to vector<1x256xf32>
    %121 = arith.addf %119, %120 : vector<1x256xf32>
    %122 = math.rsqrt %121 : vector<1x256xf32>
    %123 = arith.mulf %4, %122 : vector<1x256xf32>
    %124 = arith.mulf %112, %123 : vector<1x256xf32>
    %125 = arith.subf %5, %124 : vector<1x256xf32>
    %126 = vector.broadcast %123 : vector<1x256xf32> to vector<8x256xf32>
    %127 = arith.mulf %108, %126 : vector<8x256xf32>
    %128 = vector.broadcast %125 : vector<1x256xf32> to vector<8x256xf32>
    %129 = arith.addf %127, %128 : vector<8x256xf32>
    %cst_50 = arith.constant 0.000000e+00 : f32
    %130 = vector.broadcast %cst_50 : f32 to vector<8x256xf32>
    %131 = arith.maximumf %129, %130 : vector<8x256xf32>
    %132 = tpu.concatenate %107, %131 in 0 : vector<8x256xf32>, vector<8x256xf32> -> vector<16x256xf32>
    %133 = arith.truncf %132 : vector<16x256xf32> to vector<16x256xbf16>
    %c0_51 = arith.constant 0 : index
    %c0_52 = arith.constant 0 : index
    %134 = vector.load %arg7[%c0_51, %c0_52] : memref<256x128xbf16, #tpu.memory_space<vmem>>, vector<256x128xbf16>
    %cst_53 = arith.constant dense<0.000000e+00> : vector<16x128xf32>
    %135 = tpu.matmul %133, %134, %cst_53 {dimension_numbers = #tpu.dot_dimension_numbers<[1], [0], [0], [1], [0, 0, 1, 1], [], []>} : vector<16x256xbf16>, vector<256x128xbf16>, vector<16x128xf32> -> vector<16x128xf32>
    %136 = vector.broadcast %6 : vector<1x128xf32> to vector<16x128xf32>
    %137 = arith.addf %135, %136 : vector<16x128xf32>
    %138 = vector.extract_strided_slice %137 {offsets = [0, 0], sizes = [8, 128], strides = [1, 1]} : vector<16x128xf32> to vector<8x128xf32>
    %139 = vector.extract_strided_slice %80 {offsets = [8, 0], sizes = [8, 128], strides = [1, 1]} : vector<16x128xf32> to vector<8x128xf32>
    %140 = arith.mulf %138, %138 : vector<8x128xf32>
    %cst_54 = arith.constant dense<0.000000e+00> : vector<8xf32>
    %141 = vector.multi_reduction <add>, %140, %cst_54 [1] : vector<8x128xf32> to vector<8xf32>
    %142 = vector.shape_cast %141 : vector<8xf32> to vector<8x1xf32>
    %cst_55 = arith.constant 1.000000e-24 : f32
    %143 = vector.broadcast %cst_55 : f32 to vector<8x1xf32>
    %144 = arith.maximumf %142, %143 : vector<8x1xf32>
    %145 = math.rsqrt %144 : vector<8x1xf32>
    %146 = arith.mulf %139, %139 : vector<8x128xf32>
    %cst_56 = arith.constant dense<0.000000e+00> : vector<8xf32>
    %147 = vector.multi_reduction <add>, %146, %cst_56 [1] : vector<8x128xf32> to vector<8xf32>
    %148 = vector.shape_cast %147 : vector<8xf32> to vector<8x1xf32>
    %cst_57 = arith.constant 1.000000e-24 : f32
    %149 = vector.broadcast %cst_57 : f32 to vector<8x1xf32>
    %150 = arith.maximumf %148, %149 : vector<8x1xf32>
    %151 = math.rsqrt %150 : vector<8x1xf32>
    %152 = arith.mulf %138, %139 : vector<8x128xf32>
    %cst_58 = arith.constant dense<0.000000e+00> : vector<8xf32>
    %153 = vector.multi_reduction <add>, %152, %cst_58 [1] : vector<8x128xf32> to vector<8xf32>
    %154 = vector.shape_cast %153 : vector<8xf32> to vector<8x1xf32>
    %cst_59 = arith.constant 2.000000e+00 : f32
    %155 = vector.broadcast %cst_59 : f32 to vector<8x1xf32>
    %156 = arith.mulf %155, %154 : vector<8x1xf32>
    %157 = arith.mulf %156, %145 : vector<8x1xf32>
    %158 = arith.mulf %157, %151 : vector<8x1xf32>
    %cst_60 = arith.constant 2.000000e+00 : f32
    %159 = vector.broadcast %cst_60 : f32 to vector<8x1xf32>
    %160 = arith.subf %159, %158 : vector<8x1xf32>
    %161 = vector.extract_strided_slice %137 {offsets = [8, 0], sizes = [8, 128], strides = [1, 1]} : vector<16x128xf32> to vector<8x128xf32>
    %162 = vector.extract_strided_slice %80 {offsets = [0, 0], sizes = [8, 128], strides = [1, 1]} : vector<16x128xf32> to vector<8x128xf32>
    %163 = arith.mulf %161, %161 : vector<8x128xf32>
    %cst_61 = arith.constant dense<0.000000e+00> : vector<8xf32>
    %164 = vector.multi_reduction <add>, %163, %cst_61 [1] : vector<8x128xf32> to vector<8xf32>
    %165 = vector.shape_cast %164 : vector<8xf32> to vector<8x1xf32>
    %cst_62 = arith.constant 1.000000e-24 : f32
    %166 = vector.broadcast %cst_62 : f32 to vector<8x1xf32>
    %167 = arith.maximumf %165, %166 : vector<8x1xf32>
    %168 = math.rsqrt %167 : vector<8x1xf32>
    %169 = arith.mulf %162, %162 : vector<8x128xf32>
    %cst_63 = arith.constant dense<0.000000e+00> : vector<8xf32>
    %170 = vector.multi_reduction <add>, %169, %cst_63 [1] : vector<8x128xf32> to vector<8xf32>
    %171 = vector.shape_cast %170 : vector<8xf32> to vector<8x1xf32>
    %cst_64 = arith.constant 1.000000e-24 : f32
    %172 = vector.broadcast %cst_64 : f32 to vector<8x1xf32>
    %173 = arith.maximumf %171, %172 : vector<8x1xf32>
    %174 = math.rsqrt %173 : vector<8x1xf32>
    %175 = arith.mulf %161, %162 : vector<8x128xf32>
    %cst_65 = arith.constant dense<0.000000e+00> : vector<8xf32>
    %176 = vector.multi_reduction <add>, %175, %cst_65 [1] : vector<8x128xf32> to vector<8xf32>
    %177 = vector.shape_cast %176 : vector<8xf32> to vector<8x1xf32>
    %cst_66 = arith.constant 2.000000e+00 : f32
    %178 = vector.broadcast %cst_66 : f32 to vector<8x1xf32>
    %179 = arith.mulf %178, %177 : vector<8x1xf32>
    %180 = arith.mulf %179, %168 : vector<8x1xf32>
    %181 = arith.mulf %180, %174 : vector<8x1xf32>
    %cst_67 = arith.constant 2.000000e+00 : f32
    %182 = vector.broadcast %cst_67 : f32 to vector<8x1xf32>
    %183 = arith.subf %182, %181 : vector<8x1xf32>
    %184 = arith.addf %160, %183 : vector<8x1xf32>
    %cst_68 = arith.constant dense<0.000000e+00> : vector<1xf32>
    %185 = vector.multi_reduction <add>, %184, %cst_68 [0] : vector<8x1xf32> to vector<1xf32>
    %186 = vector.shape_cast %185 : vector<1xf32> to vector<1x1xf32>
    %cst_69 = arith.constant 8.000000e+00 : f32
    %187 = vector.broadcast %cst_69 : f32 to vector<1x1xf32>
    %188 = arith.divf %186, %187 : vector<1x1xf32>
    %c0_70 = arith.constant 0 : index
    %c0_71 = arith.constant 0 : index
    %189 = vector.load %arg9[%c0_70, %c0_71] : memref<1x1xf32, #tpu.memory_space<vmem>>, vector<1x1xf32>
    tpu.vector_store %arg9[%c0_70, %c0_71], %188 {strides = array<i32>} : memref<1x1xf32, #tpu.memory_space<vmem>>, vector<1x1xf32>,
    return
  }
}

</mosaic_0001>

<bundles_post_ra>
// kernel: byol_forward.1
= control target key start
LH: loop header
LB: loop body
LE: loop exit
PB: predicated region body
PF: predicated region fallthrough
CT: control target
= control target key end

     0   :  { %14 = vsyncpa [#allocation3], 0  ;;  %s2174_s0 = inlined_call_operand.hbm [shape: f32[8,128], index: 0, kind: input, shape index: {}]   ;;  %s2175_s1 = inlined_call_operand.hbm [shape: f32[8,128], index: 1, kind: input, shape index: {}]   ;;  %s2176_s2 = inlined_call_operand.hbm [shape: f32[8,128], index: 2, kind: input, shape index: {}]   ;;  %s2177_s3 = inlined_call_operand.hbm [shape: bf16[128,128], index: 3, kind: input, shape index: {}]   ;;  %s2178_s4 = inlined_call_operand.hbm [shape: bf16[128,256], index: 4, kind: input, shape index: {}]   ;;  %s2179_s5 = inlined_call_operand.hbm [shape: bf16[256,128], index: 5, kind: input, shape index: {}]   ;;  %s2180_s6 = inlined_call_operand.hbm [shape: bf16[128,256], index: 6, kind: input, shape index: {}]   ;;  %s2181_s7 = inlined_call_operand.hbm [shape: bf16[256,128], index: 7, kind: input, shape index: {}]   ;;  %s2182_s8 = inlined_call_operand.hbm [shape: f32[8,256], index: 8, kind: input, shape index: {}]   ;;  %s2183_s9 = inlined_call_operand.hbm [shape: f32[1,1], index: 9, kind: output, shape index: {}]  }
   0x1   :  { %15 = vsyncpa [#allocation6], 0 }
   0x2   :  { %16 = vsyncpa [#allocation9], 0 }
   0x3   :  { %17 = vsyncpa [#allocation12], 0 }
   0x4   :  { %18 = vsyncpa [#allocation15], 0  ;;  %s36_s11 = sshll.u32 %s2175_s1, 4  ;;  %s37_s11 = int_to_ptr.hbm [resolvable:$true] %s36_s11 }
   0x5   :  { %19 = vsyncpa [#allocation4], 0  ;;  %s1928_s12 = smov [#allocation5]   ;;  %s57_s16 = sshll.u32 %s2177_s3, 4  ;;  %s58_s16 = int_to_ptr.hbm [resolvable:$true] %s57_s16 }
   0x6   :  { %s38_s13 = sshll.u32 %s1928_s12, 4  ;;  %s1929_s17 = smov [#allocation8]   ;;  %s39_s13 = int_to_ptr.vmem [resolvable:$true] %s38_s13 }
   0x7   :  { %41 = dma.hbm_to_vmem [thread:$0]  %s37_s11, 128, %s39_s13, [#allocation6]  }
   0x8   :  { %s59_s18 = sshll.u32 %s1929_s17, 4  ;;  %s1930_s19 = smov 64   ;;  %s60_s18 = int_to_ptr.vmem [resolvable:$true] %s59_s18 }
   0x9   :  { %s1931_s20 = smov 4   ;;  %s83_s1 = sshll.u32 %s2179_s5, 4  ;;  %s84_s1 = int_to_ptr.hbm [resolvable:$true] %s83_s1 }
   0xa   :  { %65 = dma.hbm_to_vmem [thread:$0]  %s58_s16, 1024, %s60_s18, [#allocation9], %s1930_s19, %s1930_s19, %s1931_s20  }
   0xb   :  { %s1932_s23 = smov [#allocation11]   ;;  %s109_s3 = sshll.u32 %s2181_s7, 4  ;;  %s110_s3 = int_to_ptr.hbm [resolvable:$true] %s109_s3 }
   0xc   :  { %s85_s24 = sshll.u32 %s1932_s23, 4  ;;  %s1933_s27 = smov [#allocation14]   ;;  %s86_s24 = int_to_ptr.vmem [resolvable:$true] %s85_s24 }
   0xd   :  { %91 = dma.hbm_to_vmem [thread:$0]  %s84_s1, 2048, %s86_s24, [#allocation12], %s1930_s19, %s1930_s19, %s1931_s20  }
   0xe   :  { %s111_s28 = sshll.u32 %s1933_s27, 4  ;;  %s25_s10 = sshll.u32 %s2174_s0, 4  ;;  %s112_s28 = int_to_ptr.vmem [resolvable:$true] %s111_s28  ;;  %s26_s10 = int_to_ptr.hbm [resolvable:$true] %s25_s10 }
   0xf   :  { %117 = dma.hbm_to_vmem [thread:$0]  %s110_s3, 2048, %s112_s28, [#allocation15], %s1930_s19, %s1930_s19, %s1931_s20  }
  0x10   :  { %s47_s12 = sshll.u32 %s2176_s2, 4  ;;  %s1934_s13 = smov [#allocation2]   ;;  %s48_s12 = int_to_ptr.hbm [resolvable:$true] %s47_s12 }
  0x11   :  { %s27_s14 = sshll.u32 %s1934_s13, 4  ;;  %s1935_s7 = smov [#allocation7]   ;;  %s28_s14 = int_to_ptr.vmem [resolvable:$true] %s27_s14 }
  0x12   :  { %30 = dma.hbm_to_vmem [thread:$0]  %s26_s10, 128, %s28_s14, [#allocation3]  }
  0x13   :  { %s49_s15 = sshll.u32 %s1935_s7, 4  ;;  %s70_s18 = sshll.u32 %s2178_s4, 4  ;;  %s50_s15 = int_to_ptr.vmem [resolvable:$true] %s49_s15  ;;  %s71_s18 = int_to_ptr.hbm [resolvable:$true] %s70_s18 }
  0x14   :  { %52 = dma.hbm_to_vmem [thread:$0]  %s48_s12, 128, %s50_s15, [#allocation6]  }
  0x15   :  { %s1936_s0 = smov [#allocation10]   ;;  %s96_s2 = sshll.u32 %s2180_s6, 4  ;;  %s97_s2 = int_to_ptr.hbm [resolvable:$true] %s96_s2 }
  0x16   :  { %s72_s19 = sshll.u32 %s1936_s0, 4  ;;  %s1937_s22 = smov 128   ;;  %s73_s19 = int_to_ptr.vmem [resolvable:$true] %s72_s19 }
  0x17   :  { %s1938_s1 = smov 8   ;;  %s1939_s23 = smov [#allocation13]  }
  0x18   :  { %78 = dma.hbm_to_vmem [thread:$0]  %s71_s18, 2048, %s73_s19, [#allocation9], %s1937_s22, %s1937_s22, %s1938_s1  }
  0x19   :  { %s98_s24 = sshll.u32 %s1939_s23, 4  ;;  %s123_s4 = sshll.u32 %s2182_s8, 4  ;;  %s99_s24 = int_to_ptr.vmem [resolvable:$true] %s98_s24  ;;  %s124_s4 = int_to_ptr.hbm [resolvable:$true] %s123_s4 }
  0x1a   :  { %104 = dma.hbm_to_vmem [thread:$0]  %s97_s2, 2048, %s99_s24, [#allocation12], %s1937_s22, %s1937_s22, %s1938_s1  }
  0x1b   :  { %s1940_s3 = smov [#allocation16]  }
  0x1c   :  { %s125_s27 = sshll.u32 %s1940_s3, 4  ;;  %s126_s27 = int_to_ptr.vmem [resolvable:$true] %s125_s27 }
  0x1d   :  { %128 = dma.hbm_to_vmem [thread:$0]  %s124_s4, 256, %s126_s27, [#allocation15]  }
  0x1e   :  { %1916 = dma.done.wait [#allocation3], 128  }
  0x1f   :  { %1917 = vsyncadd [#allocation3], 4294967168 }
  0x20   :  { %1918 = dma.done.wait [#allocation6], 256  }
  0x21   :  { %1919 = vsyncadd [#allocation6], 4294967040 }
  0x22   :  { %1920 = dma.done.wait [#allocation9], 3072  }
  0x23   :  { %1921 = vsyncadd [#allocation9], 4294964224 }
  0x24   :  { %1922 = dma.done.wait [#allocation12], 4096  }
  0x25   :  { %1923 = vsyncadd [#allocation12], 4294963200 }
  0x26   :  { %1924 = dma.done.wait [#allocation15], 2304  }
  0x27   :  { %1925 = vsyncadd [#allocation15], 4294964992  ;;  %v1570_v0 = vld [vmem:[#allocation8 + $0x38] sm:$0xff]  ;;  %v1569_v1 = vld [vmem:[#allocation8 + $0x30] sm:$0xff]  ;;  %vm453_vm5 = vcmask 1040384   ;;  %s1942_s6 = smov [#allocation17]  }
  0x28   :  { %248 = vmatpush.bf16.msra.mxu0 %v1570_v0  ;;  %v1365_v2 = vld [vmem:[#allocation10 + $0x70] sm:$0xf]  ;;  %v1586_v3 = vld [vmem:[#allocation10 + $0x74] sm:$0xf0]  ;;  %v1585_v4 = vld [vmem:[#allocation10 + $0x74] sm:$0xf] }
  0x29   :  { %v1367_v5 = vld [vmem:[#allocation10 + $0x78] sm:$0xf0]  ;;  %v1366_v6 = vor.u32 %v1586_v3, %v1365_v2  ;;  %v1357_v8 = vld [vmem:[#allocation10 + $0x60] sm:$0xf]  ;;  %v1584_v9 = vld [vmem:[#allocation10 + $0x64] sm:$0xf0] }
  0x2a   :  { %v1370_v7 = vor.u32 %v1585_v4, %v1367_v5  ;;  %v1583_v10 = vld [vmem:[#allocation10 + $0x64] sm:$0xf]  ;;  %v1568_v11 = vld [vmem:[#allocation8 + $0x28] sm:$0xff]  ;;  %v1358_v13 = vor.u32 %v1584_v9, %v1357_v8  ;;  %v1349_v15 = vld [vmem:[#allocation10 + $0x50] sm:$0xf]  ;;  %v1941_v8 = vmov 8.0  }
  0x2b   :  { %v1359_v12 = vld [vmem:[#allocation10 + $0x68] sm:$0xf0]  ;;  %361 = vmatpush.bf16.msra.mxu1 %v1366_v6  ;;  %v1582_v16 = vld [vmem:[#allocation10 + $0x54] sm:$0xf0]  ;;  %v1581_v17 = vld [vmem:[#allocation10 + $0x54] sm:$0xf]  ;;  %1650 = vrcp.f32 %v1941_v8 }
  0x2c   :  { %249 = vmatpush.bf16.msra.mxu0 %v1569_v1  ;;  %375 = vmatpush.bf16.msra.mxu2 %v1370_v7  ;;  %v1362_v14 = vor.u32 %v1583_v10, %v1359_v12  ;;  %v1351_v18 = vld [vmem:[#allocation10 + $0x58] sm:$0xf0]  ;;  %v1567_v19 = vld [vmem:[#allocation8 + $0x20] sm:$0xff]  ;;  %v1350_v20 = vor.u32 %v1582_v16, %v1349_v15  ;;  %v1580_v23 = vld [vmem:[#allocation10 + $0x44] sm:$0xf0]  ;;  %s1259_s8 = sshll.u32 %s1942_s6, 4  ;;  %s1260_s8 = int_to_ptr.vmem [resolvable:$true] %s1259_s8 }
  0x2d   :  { %v1354_v21 = vor.u32 %v1581_v17, %v1351_v18  ;;  %v1341_v22 = vld [vmem:[#allocation10 + $0x40] sm:$0xf]  ;;  %v1579_v24 = vld [vmem:[#allocation10 + $0x44] sm:$0xf]  ;;  %v1343_v25 = vld [vmem:[#allocation10 + $0x48] sm:$0xf0] }
  0x2e   :  { %v1566_v26 = vld [vmem:[#allocation8 + $0x18] sm:$0xff]  ;;  %v1342_v27 = vor.u32 %v1580_v23, %v1341_v22  ;;  %v1346_v28 = vor.u32 %v1579_v24, %v1343_v25  ;;  %v1565_v29 = vld [vmem:[#allocation8 + $0x10] sm:$0xff]  ;;  %v176_v30 = vld [vmem:[#allocation2] sm:$0xff]  ;;  %s1261_s30 = sshll.u32 %s2183_s9, 4  ;;  %s1262_s30 = int_to_ptr.hbm [resolvable:$true] %s1261_s30 }
  0x2f   :  { %362 = vmatpush.bf16.msra.mxu1 %v1358_v13  ;;  %v177_v31 = vld [vmem:[#allocation5] sm:$0xff]  ;;  %v180_v32 = vld [vmem:[#allocation7] sm:$0xff]  ;;  %v1564_v35 = vld [vmem:[#allocation8 + $0x8] sm:$0xff] }
  0x30   :  { %250 = vmatpush.bf16.msra.mxu0 %v1568_v11  ;;  %376 = vmatpush.bf16.msra.mxu2 %v1362_v14  ;;  %v178_v33 = vadd.f32 %v177_v31, %v176_v30  ;;  %v181_v34 = vadd.f32 %v180_v32, %v176_v30  ;;  %v1563_v38 = vld [vmem:[#allocation8] sm:$0xff]  ;;  %v1333_v40 = vld [vmem:[#allocation10 + $0x30] sm:$0xf]  ;;  %v1578_v41 = vld [vmem:[#allocation10 + $0x34] sm:$0xf0] }
  0x31   :  { %v1577_v42 = vld [vmem:[#allocation10 + $0x34] sm:$0xf]  ;;  %v1334_v43 = vor.u32 %v1578_v41, %v1333_v40  ;;  %v1335_v44 = vld [vmem:[#allocation10 + $0x38] sm:$0xf0]  ;;  %v1325_v46 = vld [vmem:[#allocation10 + $0x20] sm:$0xf]  ;;  %v1651_v9 = vpop.eup %1650 }
  0x32   :  { %v179_v36 = vmax.f32 %v178_v33, 0.0  ;;  %v182_v37 = vmax.f32 %v181_v34, 0.0  ;;  %v1338_v45 = vor.u32 %v1577_v42, %v1335_v44  ;;  %v1576_v47 = vld [vmem:[#allocation10 + $0x24] sm:$0xf0]  ;;  %v1575_v48 = vld [vmem:[#allocation10 + $0x24] sm:$0xf]  ;;  %vm406_vm0 = vweird.f32 %v1651_v9 }
  0x33   :  { %363 = vmatpush.bf16.msra.mxu1 %v1350_v20  ;;  %v1326_v49 = vor.u32 %v1576_v47, %v1325_v46  ;;  %v1327_v50 = vld [vmem:[#allocation10 + $0x28] sm:$0xf0]  ;;  %v1317_v52 = vld [vmem:[#allocation10 + $0x10] sm:$0xf]  ;;  %v1574_v53 = vld [vmem:[#allocation10 + $0x14] sm:$0xf0] }
  0x34   :  { %251 = vmatpush.bf16.msra.mxu0 %v1567_v19  ;;  %377 = vmatpush.bf16.msra.mxu2 %v1354_v21  ;;  %v183_v39 = vpack.c.bf16 %v182_v37, %v179_v36  ;;  %v1330_v51 = vor.u32 %v1575_v48, %v1327_v50  ;;  %v1573_v54 = vld [vmem:[#allocation10 + $0x14] sm:$0xf]  ;;  %v1318_v55 = vor.u32 %v1574_v53, %v1317_v52  ;;  %v1319_v56 = vld [vmem:[#allocation10 + $0x18] sm:$0xf0]  ;;  %v1309_v58 = vld [vmem:[#allocation10] sm:$0xf] }
  0x35   :  { %v1322_v57 = vor.u32 %v1573_v54, %v1319_v56  ;;  %v1572_v59 = vld [vmem:[#allocation10 + $0x4] sm:$0xf0]  ;;  %v1571_v60 = vld [vmem:[#allocation10 + $0x4] sm:$0xf]  ;;  %v1311_v62 = vld [vmem:[#allocation10 + $0x8] sm:$0xf0] }
  0x36   :  { %v1310_v61 = vor.u32 %v1572_v59, %v1309_v58  ;;  %v1314_v63 = vor.u32 %v1571_v60, %v1311_v62  ;;  %v165_v1 = vld [vmem:[#allocation16] ss:$0 sm:$0xff]  ;;  %v402_v10 = vmul.f32 8.0, %v1651_v9  ;;  %v1602_v58 = vld [vmem:[#allocation11 + $0x78] sm:$0xff] }
  0x37   :  { %364 = vmatpush.bf16.msra.mxu1 %v1342_v27 }
  0x38   :  { %252 = vmatpush.bf16.msra.mxu0 %v1566_v26  ;;  %378 = vmatpush.bf16.msra.mxu2 %v1346_v28  ;;  %v403_v11 = vsub.f32 1.0, %v402_v10 }
  0x3a   :  { %v404_v14 = vmul.f32 %v1651_v9, %v403_v11 }
  0x3b   :  { %365 = vmatpush.bf16.msra.mxu1 %v1334_v43 }
  0x3c   :  { %253 = vmatpush.bf16.msra.mxu0 %v1565_v29  ;;  %379 = vmatpush.bf16.msra.mxu2 %v1338_v45  ;;  %v405_v17 = vadd.f32 %v1651_v9, %v404_v14  ;;  %v1592_v14 = vld [vmem:[#allocation11 + $0x28] sm:$0xff] }
  0x3e   :  { %v2031_v25 = vsel %vm406_vm0, %v1651_v9, %v405_v17 }
  0x3f   :  { %366 = vmatpush.bf16.msra.mxu1 %v1326_v49 }
  0x40   :  { %254 = vmatpush.bf16.msra.mxu0 %v1564_v35  ;;  %380 = vmatpush.bf16.msra.mxu2 %v1330_v51 }
  0x43   :  { %367 = vmatpush.bf16.msra.mxu1 %v1318_v55 }
  0x44   :  { %255 = vmatpush.bf16.msra.mxu0 %v1563_v38  ;;  %381 = vmatpush.bf16.msra.mxu2 %v1322_v57  ;;  %v1594_v57 = vld [vmem:[#allocation11 + $0x38] sm:$0xff] }
  0x45   :  { %695 = vmatpush.bf16.msra.mxu3 %v1594_v57  ;;  %v1595_v57 = vld [vmem:[#allocation11 + $0x40] sm:$0xff] }
  0x47   :  { %256 = vmatmul.bf16.vlgmr.msra.gmra.mxu0 %v183_v39  ;;  %368 = vmatpush.bf16.msra.mxu1 %v1310_v61 }
  0x48   :  { %382 = vmatpush.bf16.msra.mxu2 %v1314_v63  ;;  %709 = vmatpush.bf16.msrb.mxu0 %v1602_v58 }
  0xc4   :  { %v257_v0 = vpop.f32.mrf.mxu0 }
  0xc5   :  { %v258_v2 = vadd.f32 %v257_v0, %v165_v1 }
  0xc7   :  { %v262_v5 = vmax.f32 %v258_v2, 0.0 }
  0xcc   :  { %v259_v3 = vpop.f32.mrf.mxu0 }
  0xcd   :  { %v260_v4 = vadd.f32 %v259_v3, %v165_v1  ;;  %v1593_v3 = vld [vmem:[#allocation11 + $0x30] sm:$0xff] }
  0xce   :  { %696 = vmatpush.bf16.msra.mxu3 %v1593_v3 }
  0xcf   :  { %v263_v6 = vmax.f32 %v260_v4, 0.0  ;;  %v1601_v4 = vld [vmem:[#allocation11 + $0x70] sm:$0xff] }
  0xd0   :  { %710 = vmatpush.bf16.msrb.mxu0 %v1601_v4 }
  0xd1   :  { %v264_v7 = vpack.c.bf16 %v263_v6, %v262_v5 }
  0xd2   :  { %697 = vmatpush.bf16.msra.mxu3 %v1592_v14  ;;  %v1485_v14 = vld [vmem:[#allocation13 + $0x60] sm:$0xf] }
  0xd3   :  { %369 = vmatmul.bf16.vlgmr.msra.gmra.mxu1 %v264_v7  ;;  %383 = vmatmul.bf16.vlgmr.msra.gmra.mxu2 %v264_v7 }
 0x150   :  { %v2020_v12 = vpop.f32.mrf.mxu1 }
 0x151   :  { %v389_v13 = vrot.slane %v2020_v12, 4 }
 0x153   :  { %v390_v15 = vadd.f32 %v389_v13, %v2020_v12 }
 0x155   :  { %v391_v16 = vrot.slane %v390_v15, 2 }
 0x156   :  { %v2024_v18 = vpop.f32.mrf.mxu2 }
 0x157   :  { %v392_v19 = vadd.f32 %v391_v16, %v390_v15  ;;  %v395_v20 = vrot.slane %v2024_v18, 4  ;;  %v1600_v15 = vld [vmem:[#allocation11 + $0x68] sm:$0xff] }
 0x158   :  { %v2027_v21 = vpop.f32.mrf.mxu1  ;;  %711 = vmatpush.bf16.msrb.mxu0 %v1600_v15 }
 0x159   :  { %v393_v22 = vrot.slane %v392_v19, 1  ;;  %v396_v23 = vadd.f32 %v395_v20, %v2024_v18  ;;  %v481_v24 = vrot.slane %v2027_v21, 4 }
 0x15b   :  { %v394_v26 = vadd.f32 %v393_v22, %v392_v19  ;;  %v397_v27 = vrot.slane %v396_v23, 2  ;;  %v482_v28 = vadd.f32 %v481_v24, %v2027_v21  ;;  %v1591_v24 = vld [vmem:[#allocation11 + $0x20] sm:$0xff] }
 0x15c   :  { %698 = vmatpush.bf16.msra.mxu3 %v1591_v24 }
 0x15d   :  { %v2035_v29 = vmul.f32 %v2031_v25, %v394_v26  ;;  %v398_v30 = vadd.f32 %v397_v27, %v396_v23  ;;  %v483_v31 = vrot.slane %v482_v28, 2  ;;  %v1599_v26 = vld [vmem:[#allocation11 + $0x60] sm:$0xff] }
 0x15e   :  { %v2037_v32 = vpop.f32.mrf.mxu2  ;;  %712 = vmatpush.bf16.msrb.mxu0 %v1599_v26 }
 0x15f   :  { %v410_v33 = vsub.f32 %v2020_v12, %v2035_v29  ;;  %v399_v34 = vrot.slane %v398_v30, 1  ;;  %v484_v35 = vadd.f32 %v483_v31, %v482_v28  ;;  %v487_v36 = vrot.slane %v2037_v32, 4 }
 0x161   :  { %v412_v37 = vmul.f32 %v410_v33, %v410_v33  ;;  %v400_v38 = vadd.f32 %v399_v34, %v398_v30  ;;  %v485_v39 = vrot.slane %v484_v35, 1  ;;  %v488_v40 = vadd.f32 %v487_v36, %v2037_v32  ;;  %v1590_v36 = vld [vmem:[#allocation11 + $0x18] sm:$0xff] }
 0x162   :  { %699 = vmatpush.bf16.msra.mxu3 %v1590_v36 }
 0x163   :  { %v414_v41 = vrot.slane %v412_v37, 4  ;;  %v2044_v42 = vmul.f32 %v2031_v25, %v400_v38  ;;  %v486_v43 = vadd.f32 %v485_v39, %v484_v35  ;;  %v489_v44 = vrot.slane %v488_v40, 2 }
 0x165   :  { %v415_v45 = vadd.f32 %v414_v41, %v412_v37  ;;  %v411_v46 = vsub.f32 %v2024_v18, %v2044_v42  ;;  %v2049_v47 = vmul.f32 %v486_v43, %v2031_v25  ;;  %v490_v48 = vadd.f32 %v489_v44, %v488_v40  ;;  %v1598_v37 = vld [vmem:[#allocation11 + $0x58] sm:$0xff]  ;;  %v1589_v41 = vld [vmem:[#allocation11 + $0x10] sm:$0xff] }
 0x166   :  { %713 = vmatpush.bf16.msrb.mxu0 %v1598_v37  ;;  %v1597_v43 = vld [vmem:[#allocation11 + $0x50] sm:$0xff]  ;;  %700 = vmatpush.bf16.msra.mxu3 %v1589_v41 }
 0x167   :  { %v416_v49 = vrot.slane %v415_v45, 2  ;;  %v413_v50 = vmul.f32 %v411_v46, %v411_v46  ;;  %v495_v51 = vsub.f32 %v2027_v21, %v2049_v47  ;;  %v491_v52 = vrot.slane %v490_v48, 1 }
 0x169   :  { %v417_v53 = vadd.f32 %v416_v49, %v415_v45  ;;  %v420_v54 = vrot.slane %v413_v50, 4  ;;  %v497_v55 = vmul.f32 %v495_v51, %v495_v51  ;;  %v492_v56 = vadd.f32 %v491_v52, %v490_v48  ;;  %v1588_v49 = vld [vmem:[#allocation11 + $0x8] sm:$0xff] }
 0x16a   :  { %714 = vmatpush.bf16.msrb.mxu0 %v1597_v43  ;;  %701 = vmatpush.bf16.msra.mxu3 %v1588_v49  ;;  %v169_v49 = vld [vmem:[#allocation16 + $0x2] ss:$8 sm:$0x3] }
 0x16b   :  { %v418_v59 = vrot.slane %v417_v53, 1  ;;  %v421_v60 = vadd.f32 %v420_v54, %v413_v50  ;;  %v499_v61 = vrot.slane %v497_v55, 4  ;;  %v2054_v62 = vmul.f32 %v492_v56, %v2031_v25  ;;  %v1596_v50 = vld [vmem:[#allocation11 + $0x48] sm:$0xff]  ;;  %v1587_v56 = vld [vmem:[#allocation11] sm:$0xff] }
 0x16d   :  { %v419_v63 = vadd.f32 %v418_v59, %v417_v53  ;;  %v422_v0 = vrot.slane %v421_v60, 2  ;;  %v500_v1 = vadd.f32 %v499_v61, %v497_v55  ;;  %v496_v2 = vsub.f32 %v2037_v32, %v2054_v62 }
 0x16e   :  { %715 = vmatpush.bf16.msrb.mxu0 %v1596_v50  ;;  %702 = vmatpush.bf16.msra.mxu3 %v1587_v56 }
 0x16f   :  { %v426_v5 = vmul.f32 %v419_v63, %v2031_v25  ;;  %v423_v6 = vadd.f32 %v422_v0, %v421_v60  ;;  %v501_v7 = vrot.slane %v500_v1, 2  ;;  %v498_v8 = vmul.f32 %v496_v2, %v496_v2  ;;  %v167_v0 = vld [vmem:[#allocation16 + $0x1] ss:$8 sm:$0x3] }
 0x171   :  { %v2059_v9 = vadd.f32 1e-05, %v426_v5  ;;  %v424_v10 = vrot.slane %v423_v6, 1  ;;  %v502_v11 = vadd.f32 %v501_v7, %v500_v1  ;;  %v505_v13 = vrot.slane %v498_v8, 4  ;;  %v1493_v5 = vld [vmem:[#allocation13 + $0x70] sm:$0xf] }
 0x172   :  { %716 = vmatpush.bf16.msrb.mxu0 %v1595_v57 }
 0x173   :  { %1652 = vrsqrt.f32 %v2059_v9  ;;  %v425_v16 = vadd.f32 %v424_v10, %v423_v6  ;;  %v503_v17 = vrot.slane %v502_v11, 1  ;;  %v506_v19 = vadd.f32 %v505_v13, %v498_v8  ;;  %v1618_v6 = vld [vmem:[#allocation13 + $0x74] sm:$0xf0]  ;;  %v1495_v13 = vld [vmem:[#allocation13 + $0x78] sm:$0xf0] }
 0x174   :  { %vm436_vm6 = vweird.f32 %v2059_v9  ;;  %v1494_v10 = vor.u32 %v1618_v6, %v1493_v5 }
 0x175   :  { %v427_v20 = vmul.f32 %v425_v16, %v2031_v25  ;;  %v504_v22 = vadd.f32 %v503_v17, %v502_v11  ;;  %v507_v23 = vrot.slane %v506_v19, 2  ;;  %v1617_v11 = vld [vmem:[#allocation13 + $0x74] sm:$0xf]  ;;  %v1616_v17 = vld [vmem:[#allocation13 + $0x64] sm:$0xf0] }
 0x176   :  { %v1498_v16 = vor.u32 %v1617_v11, %v1495_v13  ;;  %820 = vmatpush.bf16.msrb.mxu1 %v1494_v10  ;;  %v1486_v24 = vor.u32 %v1616_v17, %v1485_v14  ;;  %v1612_v11 = vld [vmem:[#allocation13 + $0x44] sm:$0xf0]  ;;  %v1611_v13 = vld [vmem:[#allocation13 + $0x44] sm:$0xf]  ;;  %v1609_v17 = vld [vmem:[#allocation13 + $0x34] sm:$0xf] }
 0x177   :  { %v429_v27 = vadd.f32 1e-05, %v427_v20  ;;  %v511_v28 = vmul.f32 %v504_v22, %v2031_v25  ;;  %v508_v30 = vadd.f32 %v507_v23, %v506_v19  ;;  %v1615_v19 = vld [vmem:[#allocation13 + $0x64] sm:$0xf] }
 0x178   :  { %834 = vmatpush.bf16.msrb.mxu2 %v1498_v16  ;;  %v1610_v16 = vld [vmem:[#allocation13 + $0x34] sm:$0xf0] }
 0x179   :  { %v1653_v31 = vpop.eup %1652  ;;  %1654 = vrsqrt.f32 %v429_v27  ;;  %v2064_v33 = vadd.f32 1e-05, %v511_v28  ;;  %v509_v35 = vrot.slane %v508_v30, 1  ;;  %vm446_vm3 = vweird.f32 %v429_v27  ;;  %v1614_v28 = vld [vmem:[#allocation13 + $0x54] sm:$0xf0] }
 0x17a   :  { %v431_v34 = vmul.f32 %v1653_v31, %v2059_v9  ;;  %vm437_vm2 = vweird.f32 %v1653_v31  ;;  %v1487_v9 = vld [vmem:[#allocation13 + $0x68] sm:$0xf0]  ;;  %821 = vmatpush.bf16.msrb.mxu1 %v1486_v24  ;;  %v1607_v24 = vld [vmem:[#allocation13 + $0x24] sm:$0xf] }
 0x17b   :  { %1656 = vrsqrt.f32 %v2064_v33  ;;  %v510_v39 = vadd.f32 %v509_v35, %v508_v30  ;;  %vm438_vm7 = vmor %vm436_vm6, %vm437_vm2  ;;  %v1490_v26 = vor.u32 %v1615_v19, %v1487_v9  ;;  %v1479_v35 = vld [vmem:[#allocation13 + $0x58] sm:$0xf0]  ;;  %vm521_vm12 = vweird.f32 %v2064_v33 }
 0x17c   :  { %v432_v38 = vmul.f32 %v1653_v31, %v431_v34  ;;  %v1613_v34 = vld [vmem:[#allocation13 + $0x54] sm:$0xf]  ;;  %v1463_v9 = vld [vmem:[#allocation13 + $0x38] sm:$0xf0] }
 0x17d   :  { %v512_v40 = vmul.f32 %v510_v39, %v2031_v25  ;;  %835 = vmatpush.bf16.msrb.mxu2 %v1490_v26  ;;  %v1482_v41 = vor.u32 %v1613_v34, %v1479_v35  ;;  %v1605_v34 = vld [vmem:[#allocation13 + $0x14] sm:$0xf] }
 0x17e   :  { %v433_v45 = vmul.f32 0.5, %v432_v38 }
 0x17f   :  { %v1655_v44 = vpop.eup %1654  ;;  %v2069_v48 = vadd.f32 1e-05, %v512_v40 }
 0x180   :  { %v441_v46 = vmul.f32 %v1655_v44, %v429_v27  ;;  %v434_v54 = vsub.f32 1.5, %v433_v45  ;;  %vm447_vm1 = vweird.f32 %v1655_v44  ;;  %v1477_v27 = vld [vmem:[#allocation13 + $0x50] sm:$0xf] }
 0x181   :  { %v2071_v51 = vpop.eup %1656  ;;  %1658 = vrsqrt.f32 %v2069_v48  ;;  %vm448_vm4 = vmor %vm446_vm3, %vm447_vm1  ;;  %vm531_vm10 = vweird.f32 %v2069_v48  ;;  %v1478_v40 = vor.u32 %v1614_v28, %v1477_v27  ;;  %836 = vmatpush.bf16.msrb.mxu2 %v1482_v41  ;;  %v1455_v27 = vld [vmem:[#allocation13 + $0x28] sm:$0xf0] }
 0x182   :  { %v442_v52 = vmul.f32 %v1655_v44, %v441_v46  ;;  %v516_v53 = vmul.f32 %v2071_v51, %v2064_v33  ;;  %v435_v60 = vmul.f32 %v1653_v31, %v434_v54  ;;  %vm522_vm9 = vweird.f32 %v2071_v51 }
 0x183   :  { %vm523_vm13 = vmor %vm521_vm12, %vm522_vm9  ;;  %822 = vmatpush.bf16.msrb.mxu1 %v1478_v40  ;;  %v1458_v28 = vor.u32 %v1607_v24, %v1455_v27  ;;  %v1603_v40 = vld [vmem:[#allocation13 + $0x4] sm:$0xf] }
 0x184   :  { %v443_v55 = vmul.f32 0.5, %v442_v52  ;;  %v517_v59 = vmul.f32 %v2071_v51, %v516_v53  ;;  %v439_v7 = vsel %vm438_vm7, %v1653_v31, %v435_v60 }
 0x186   :  { %v444_v58 = vsub.f32 1.5, %v443_v55  ;;  %v518_v2 = vmul.f32 0.5, %v517_v59 }
 0x187   :  { %v1659_v63 = vpop.eup %1658 }
 0x188   :  { %v445_v61 = vmul.f32 %v1655_v44, %v444_v58  ;;  %v526_v3 = vmul.f32 %v1659_v63, %v2069_v48  ;;  %v519_v22 = vsub.f32 1.5, %v518_v2  ;;  %vm532_vm8 = vweird.f32 %v1659_v63 }
 0x189   :  { %vm533_vm11 = vmor %vm531_vm10, %vm532_vm8 }
 0x18a   :  { %v449_v1 = vsel %vm448_vm4, %v1655_v44, %v445_v61  ;;  %v527_v8 = vmul.f32 %v1659_v63, %v526_v3  ;;  %v520_v38 = vmul.f32 %v2071_v51, %v519_v22  ;;  %v1453_v22 = vld [vmem:[#allocation13 + $0x20] sm:$0xf] }
 0x18b   :  { %v452_v4 = vrot.slane %v449_v1, 7 }
 0x18c   :  { %v528_v23 = vmul.f32 0.5, %v527_v8  ;;  %v524_v48 = vsel %vm523_vm13, %v2071_v51, %v520_v38  ;;  %v1437_v38 = vld [vmem:[#allocation13] sm:$0xf] }
 0x18d   :  { %v454_v15 = vsel %vm453_vm5, %v439_v7, %v452_v4 }
 0x18e   :  { %v456_v20 = vmul.f32 %v454_v15, %v167_v0  ;;  %v529_v31 = vsub.f32 1.5, %v528_v23  ;;  %v1471_v15 = vld [vmem:[#allocation13 + $0x48] sm:$0xf0]  ;;  %v1608_v23 = vld [vmem:[#allocation13 + $0x24] sm:$0xf0] }
 0x18f   :  { %v1454_v26 = vor.u32 %v1608_v23, %v1453_v22 }
 0x190   :  { %v459_v30 = vperm.slane %v456_v20, 1  ;;  %v458_v36 = vperm.slane %v456_v20, 0  ;;  %v530_v39 = vmul.f32 %v1659_v63, %v529_v31  ;;  %v1466_v20 = vor.u32 %v1609_v17, %v1463_v9  ;;  %v1606_v31 = vld [vmem:[#allocation13 + $0x14] sm:$0xf0] }
 0x192   :  { %v463_v37 = vmul.f32 %v459_v30, %v2044_v42  ;;  %v534_v44 = vsel %vm533_vm11, %v1659_v63, %v530_v39  ;;  %v462_v46 = vmul.f32 %v458_v36, %v2035_v29  ;;  %v471_v51 = vmul.f32 %v459_v30, %v2024_v18  ;;  %v1445_v30 = vld [vmem:[#allocation13 + $0x10] sm:$0xf]  ;;  %v1604_v39 = vld [vmem:[#allocation13 + $0x4] sm:$0xf0] }
 0x193   :  { %v537_v45 = vrot.slane %v534_v44, 7  ;;  %v470_v59 = vmul.f32 %v458_v36, %v2020_v12  ;;  %v1469_v12 = vld [vmem:[#allocation13 + $0x40] sm:$0xf]  ;;  %v1446_v35 = vor.u32 %v1606_v31, %v1445_v30  ;;  %v1447_v36 = vld [vmem:[#allocation13 + $0x18] sm:$0xf0]  ;;  %v1438_v41 = vor.u32 %v1604_v39, %v1437_v38 }
 0x194   :  { %v466_v43 = vrot.slane %v463_v37, 7  ;;  %v1470_v14 = vor.u32 %v1612_v11, %v1469_v12  ;;  %v1450_v37 = vor.u32 %v1605_v34, %v1447_v36  ;;  %v1634_v36 = vld [vmem:[#allocation14 + $0x78] sm:$0xff] }
 0x195   :  { %v538_v42 = vsel %vm453_vm5, %v524_v48, %v537_v45  ;;  %v170_v48 = vld [vmem:[#allocation16 + $0x3] ss:$0 sm:$0xff]  ;;  %1160 = vmatpush.bf16.msra.mxu0 %v1634_v36 }
 0x196   :  { %v467_v50 = vsel %vm453_vm5, %v462_v46, %v466_v43  ;;  %v540_v52 = vmul.f32 %v538_v42, %v167_v0  ;;  %823 = vmatpush.bf16.msrb.mxu1 %v1470_v14  ;;  %v1439_v43 = vld [vmem:[#allocation13 + $0x8] sm:$0xf0] }
 0x197   :  { %v469_v54 = vsub.f32 %v169_v49, %v467_v50  ;;  %v1442_v44 = vor.u32 %v1603_v40, %v1439_v43 }
 0x198   :  { %v543_v53 = vperm.slane %v540_v52, 1  ;;  %v542_v55 = vperm.slane %v540_v52, 0 }
 0x199   :  { %v473_v57 = vperm.slane %v469_v54, 0  ;;  %v474_v29 = vperm.slane %v469_v54, 1 }
 0x19a   :  { %v547_v33 = vmul.f32 %v543_v53, %v2054_v62  ;;  %v546_v58 = vmul.f32 %v542_v55, %v2049_v47  ;;  %v555_v0 = vmul.f32 %v543_v53, %v2037_v32  ;;  %v554_v2 = vmul.f32 %v542_v55, %v2027_v21  ;;  %v1461_v21 = vld [vmem:[#allocation13 + $0x30] sm:$0xf] }
 0x19b   :  { %v477_v63 = vadd.f32 %v473_v57, %v470_v59  ;;  %v478_v1 = vadd.f32 %v474_v29, %v471_v51  ;;  %v1474_v32 = vor.u32 %v1611_v13, %v1471_v15  ;;  %v1462_v19 = vor.u32 %v1610_v16, %v1461_v21 }
 0x19c   :  { %v550_v56 = vrot.slane %v547_v33, 7 }
 0x19d   :  { %v479_v6 = vmax.f32 %v477_v63, 0.0  ;;  %v480_v7 = vmax.f32 %v478_v1, 0.0  ;;  %837 = vmatpush.bf16.msrb.mxu2 %v1474_v32  ;;  %824 = vmatpush.bf16.msrb.mxu1 %v1462_v19 }
 0x19e   :  { %v551_v60 = vsel %vm453_vm5, %v546_v58, %v550_v56 }
 0x19f   :  { %v553_v61 = vsub.f32 %v169_v49, %v551_v60 }
 0x1a1   :  { %v557_v3 = vperm.slane %v553_v61, 0  ;;  %v558_v62 = vperm.slane %v553_v61, 1  ;;  %838 = vmatpush.bf16.msrb.mxu2 %v1466_v20  ;;  %825 = vmatpush.bf16.msrb.mxu1 %v1454_v26 }
 0x1a3   :  { %v561_v4 = vadd.f32 %v557_v3, %v554_v2  ;;  %v562_v5 = vadd.f32 %v558_v62, %v555_v0 }
 0x1a5   :  { %v563_v47 = vmax.f32 %v561_v4, 0.0  ;;  %v564_v8 = vmax.f32 %v562_v5, 0.0  ;;  %839 = vmatpush.bf16.msrb.mxu2 %v1458_v28  ;;  %826 = vmatpush.bf16.msrb.mxu1 %v1446_v35  ;;  %v1626_v35 = vld [vmem:[#allocation14 + $0x38] sm:$0xff] }
 0x1a6   :  { %1146 = vmatpush.bf16.msrb.mxu3 %v1626_v35 }
 0x1a7   :  { %v565_v18 = vpack.c.bf16 %v563_v47, %v479_v6  ;;  %v566_v10 = vpack.c.bf16 %v564_v8, %v480_v7 }
 0x1a9   :  { %703 = vmatmul.bf16.vlgmr.msra.gmra.mxu3 %v565_v18  ;;  %717 = vmatmul.bf16.vlgmr.msrb.gmra.mxu0 %v566_v10 }
 0x1aa   :  { %840 = vmatpush.bf16.msrb.mxu2 %v1450_v37  ;;  %827 = vmatpush.bf16.msrb.mxu1 %v1438_v41 }
 0x1ae   :  { %841 = vmatpush.bf16.msrb.mxu2 %v1442_v44 }
 0x226   :  { %v718_v45 = vpop.f32.mrf.mxu0 }
 0x22c   :  { %v704_v46 = vpop.f32.mrf.mxu3 }
 0x22d   :  { %v705_v42 = vadd.f32 %v704_v46, %v170_v48  ;;  %v1625_v46 = vld [vmem:[#allocation14 + $0x30] sm:$0xff] }
 0x22e   :  { %v720_v52 = vpop.f32.mrf.mxu0  ;;  %1147 = vmatpush.bf16.msrb.mxu3 %v1625_v46 }
 0x22f   :  { %v2096_v53 = vadd.f32 %v718_v45, %v705_v42 }
 0x231   :  { %v1223_v56 = vmul.f32 %v2096_v53, %v2096_v53 }
 0x234   :  { %v706_v49 = vpop.f32.mrf.mxu3 }
 0x235   :  { %v707_v50 = vadd.f32 %v706_v49, %v170_v48  ;;  %v1633_v48 = vld [vmem:[#allocation14 + $0x70] sm:$0xff] }
 0x236   :  { %1161 = vmatpush.bf16.msra.mxu0 %v1633_v48 }
 0x237   :  { %v2098_v54 = vadd.f32 %v720_v52, %v707_v50 }
 0x239   :  { %v1188_v55 = vmul.f32 %v2098_v54, %v2098_v54  ;;  %v723_v33 = vpack.c.bf16 %v2098_v54, %v2096_v53 }
 0x23b   :  { %1189 = vadd.xlane.f32.xlu1 %v1188_v55  ;;  %828 = vmatmul.bf16.vlgmr.msrb.gmra.mxu1 %v723_v33 }
 0x23c   :  { %842 = vmatmul.bf16.vlgmr.msrb.gmra.mxu2 %v723_v33 }
 0x243   :  { %1224 = vadd.xlane.f32.xlu1 %v1223_v56 }
 0x2b8   :  { %v2106_v57 = vpop.f32.mrf.mxu1 }
 0x2b9   :  { %v848_v58 = vrot.slane %v2106_v57, 4 }
 0x2bb   :  { %v849_v29 = vadd.f32 %v848_v58, %v2106_v57 }
 0x2bd   :  { %v850_v51 = vrot.slane %v849_v29, 2 }
 0x2bf   :  { %v851_v59 = vadd.f32 %v850_v51, %v849_v29  ;;  %v2110_v60 = vpop.f32.mrf.mxu2  ;;  %v1624_v29 = vld [vmem:[#allocation14 + $0x28] sm:$0xff] }
 0x2c0   :  { %v854_v61 = vrot.slane %v2110_v60, 4  ;;  %v2113_v63 = vpop.f32.mrf.mxu1  ;;  %v1632_v51 = vld [vmem:[#allocation14 + $0x68] sm:$0xff]  ;;  %1148 = vmatpush.bf16.msrb.mxu3 %v1624_v29 }
 0x2c1   :  { %v852_v1 = vrot.slane %v851_v59, 1  ;;  %v932_v0 = vrot.slane %v2113_v63, 4  ;;  %1162 = vmatpush.bf16.msra.mxu0 %v1632_v51 }
 0x2c2   :  { %v855_v2 = vadd.f32 %v854_v61, %v2110_v60 }
 0x2c3   :  { %v853_v3 = vadd.f32 %v852_v1, %v851_v59  ;;  %v933_v62 = vadd.f32 %v932_v0, %v2113_v63 }
 0x2c4   :  { %v856_v4 = vrot.slane %v855_v2, 2 }
 0x2c5   :  { %v2119_v5 = vmul.f32 %v853_v3, %v2031_v25  ;;  %v934_v6 = vrot.slane %v933_v62, 2 }
 0x2c6   :  { %v857_v47 = vadd.f32 %v856_v4, %v855_v2  ;;  %v1631_v4 = vld [vmem:[#allocation14 + $0x60] sm:$0xff] }
 0x2c7   :  { %v862_v7 = vsub.f32 %v2106_v57, %v2119_v5  ;;  %v935_v8 = vadd.f32 %v934_v6, %v933_v62  ;;  %v2123_v18 = vpop.f32.mrf.mxu2  ;;  %v1623_v62 = vld [vmem:[#allocation14 + $0x20] sm:$0xff]  ;;  %1163 = vmatpush.bf16.msra.mxu0 %v1631_v4 }
 0x2c8   :  { %v858_v10 = vrot.slane %v857_v47, 1  ;;  %v938_v12 = vrot.slane %v2123_v18, 4  ;;  %1149 = vmatpush.bf16.msrb.mxu3 %v1623_v62 }
 0x2c9   :  { %v864_v11 = vmul.f32 %v862_v7, %v862_v7  ;;  %v936_v13 = vrot.slane %v935_v8, 1 }
 0x2ca   :  { %v859_v14 = vadd.f32 %v858_v10, %v857_v47  ;;  %v939_v15 = vadd.f32 %v938_v12, %v2123_v18 }
 0x2cb   :  { %v866_v32 = vrot.slane %v864_v11, 4  ;;  %v937_v21 = vadd.f32 %v936_v13, %v935_v8  ;;  %v1630_v13 = vld [vmem:[#allocation14 + $0x58] sm:$0xff] }
 0x2cc   :  { %v2128_v16 = vmul.f32 %v859_v14, %v2031_v25  ;;  %v940_v17 = vrot.slane %v939_v15, 2  ;;  %1164 = vmatpush.bf16.msra.mxu0 %v1630_v13 }
 0x2cd   :  { %v867_v19 = vadd.f32 %v866_v32, %v864_v11  ;;  %v2131_v9 = vmul.f32 %v937_v21, %v2031_v25  ;;  %v1622_v11 = vld [vmem:[#allocation14 + $0x18] sm:$0xff]  ;;  %v1621_v21 = vld [vmem:[#allocation14 + $0x10] sm:$0xff] }
 0x2ce   :  { %v863_v20 = vsub.f32 %v2110_v60, %v2128_v16  ;;  %v941_v22 = vadd.f32 %v940_v17, %v939_v15  ;;  %1150 = vmatpush.bf16.msrb.mxu3 %v1622_v11  ;;  %v1629_v17 = vld [vmem:[#allocation14 + $0x50] sm:$0xff] }
 0x2cf   :  { %v868_v23 = vrot.slane %v867_v19, 2  ;;  %v946_v24 = vsub.f32 %v2113_v63, %v2131_v9 }
 0x2d0   :  { %v865_v26 = vmul.f32 %v863_v20, %v863_v20  ;;  %v942_v27 = vrot.slane %v941_v22, 1  ;;  %1165 = vmatpush.bf16.msra.mxu0 %v1629_v17 }
 0x2d1   :  { %v869_v28 = vadd.f32 %v868_v23, %v867_v19  ;;  %v948_v30 = vmul.f32 %v946_v24, %v946_v24 }
 0x2d2   :  { %v872_v31 = vrot.slane %v865_v26, 4  ;;  %v943_v34 = vadd.f32 %v942_v27, %v941_v22  ;;  %1151 = vmatpush.bf16.msrb.mxu3 %v1621_v21 }
 0x2d3   :  { %v870_v37 = vrot.slane %v869_v28, 1  ;;  %v950_v38 = vrot.slane %v948_v30, 4 }
 0x2d4   :  { %v873_v39 = vadd.f32 %v872_v31, %v865_v26  ;;  %v2138_v40 = vmul.f32 %v943_v34, %v2031_v25 }
 0x2d5   :  { %v871_v41 = vadd.f32 %v870_v37, %v869_v28  ;;  %v951_v43 = vadd.f32 %v950_v38, %v948_v30  ;;  %v1620_v28 = vld [vmem:[#allocation14 + $0x8] sm:$0xff]  ;;  %v1619_v37 = vld [vmem:[#allocation14] sm:$0xff] }
 0x2d6   :  { %v874_v44 = vrot.slane %v873_v39, 2  ;;  %v947_v45 = vsub.f32 %v2123_v18, %v2138_v40  ;;  %v1628_v30 = vld [vmem:[#allocation14 + $0x48] sm:$0xff]  ;;  %1152 = vmatpush.bf16.msrb.mxu3 %v1620_v28  ;;  %v1627_v38 = vld [vmem:[#allocation14 + $0x40] sm:$0xff] }
 0x2d7   :  { %v878_v42 = vmul.f32 %v871_v41, %v2031_v25  ;;  %v952_v49 = vrot.slane %v951_v43, 2  ;;  %1166 = vmatpush.bf16.msra.mxu0 %v1628_v30 }
 0x2d8   :  { %v875_v50 = vadd.f32 %v874_v44, %v873_v39  ;;  %v949_v52 = vmul.f32 %v947_v45, %v947_v45 }
 0x2d9   :  { %v2143_v55 = vadd.f32 1e-05, %v878_v42  ;;  %v953_v33 = vadd.f32 %v952_v49, %v951_v43  ;;  %v172_v42 = vld [vmem:[#allocation16 + $0x4] ss:$8 sm:$0x3] }
 0x2da   :  { %v876_v56 = vrot.slane %v875_v50, 1  ;;  %v956_v58 = vrot.slane %v949_v52, 4  ;;  %1153 = vmatpush.bf16.msrb.mxu3 %v1619_v37  ;;  %v175_v37 = vld [vmem:[#allocation16 + $0x6] ss:$0 sm:$0xff] }
 0x2db   :  { %1660 = vrsqrt.f32 %v2143_v55  ;;  %v954_v59 = vrot.slane %v953_v33, 1  ;;  %1167 = vmatpush.bf16.msra.mxu0 %v1627_v38  ;;  %vm888_vm2 = vweird.f32 %v2143_v55 }
 0x2dc   :  { %v877_v61 = vadd.f32 %v876_v56, %v875_v50  ;;  %v957_v1 = vadd.f32 %v956_v58, %v949_v52 }
 0x2dd   :  { %v955_v0 = vadd.f32 %v954_v59, %v953_v33 }
 0x2de   :  { %v879_v2 = vmul.f32 %v877_v61, %v2031_v25  ;;  %v958_v3 = vrot.slane %v957_v1, 2 }
 0x2df   :  { %v962_v6 = vmul.f32 %v955_v0, %v2031_v25 }
 0x2e0   :  { %v881_v47 = vadd.f32 1e-05, %v879_v2  ;;  %v959_v7 = vadd.f32 %v958_v3, %v957_v1 }
 0x2e1   :  { %v1661_v8 = vpop.eup %1660  ;;  %v2148_v10 = vadd.f32 1e-05, %v962_v6 }
 0x2e2   :  { %v883_v12 = vmul.f32 %v1661_v8, %v2143_v55  ;;  %1662 = vrsqrt.f32 %v881_v47  ;;  %v960_v14 = vrot.slane %v959_v7, 1  ;;  %vm889_vm15 = vweird.f32 %v1661_v8 }
 0x2e3   :  { %1664 = vrsqrt.f32 %v2148_v10  ;;  %vm898_vm0 = vweird.f32 %v881_v47  ;;  %vm890_vm3 = vmor %vm888_vm2, %vm889_vm15  ;;  %vm972_vm9 = vweird.f32 %v2148_v10 }
 0x2e4   :  { %v884_v15 = vmul.f32 %v1661_v8, %v883_v12  ;;  %v961_v32 = vadd.f32 %v960_v14, %v959_v7 }
 0x2e6   :  { %v963_v19 = vmul.f32 %v961_v32, %v2031_v25  ;;  %v885_v23 = vmul.f32 0.5, %v884_v15 }
 0x2e8   :  { %v1663_v20 = vpop.eup %1662  ;;  %v965_v26 = vadd.f32 1e-05, %v963_v19  ;;  %v886_v34 = vsub.f32 1.5, %v885_v23 }
 0x2e9   :  { %v1665_v22 = vpop.eup %1664  ;;  %v893_v24 = vmul.f32 %v1663_v20, %v881_v47  ;;  %vm899_vm14 = vweird.f32 %v1663_v20  ;;  %v174_v47 = vld [vmem:[#allocation16 + $0x5] ss:$8 sm:$0x3] }
 0x2ea   :  { %v967_v27 = vmul.f32 %v1665_v22, %v2148_v10  ;;  %1666 = vrsqrt.f32 %v965_v26  ;;  %v887_v43 = vmul.f32 %v1661_v8, %v886_v34  ;;  %vm900_vm1 = vmor %vm898_vm0, %vm899_vm14  ;;  %vm973_vm6 = vweird.f32 %v1665_v22 }
 0x2eb   :  { %v894_v31 = vmul.f32 %v1663_v20, %v893_v24  ;;  %vm982_vm7 = vweird.f32 %v965_v26  ;;  %vm974_vm10 = vmor %vm972_vm9, %vm973_vm6 }
 0x2ec   :  { %v968_v36 = vmul.f32 %v1665_v22, %v967_v27  ;;  %v891_v52 = vsel %vm890_vm3, %v1661_v8, %v887_v43 }
 0x2ed   :  { %v895_v35 = vmul.f32 0.5, %v894_v31 }
 0x2ee   :  { %v969_v45 = vmul.f32 0.5, %v968_v36 }
 0x2ef   :  { %v896_v39 = vsub.f32 1.5, %v895_v35 }
 0x2f0   :  { %v1667_v41 = vpop.eup %1666  ;;  %v970_v56 = vsub.f32 1.5, %v969_v45 }
 0x2f1   :  { %v897_v44 = vmul.f32 %v1663_v20, %v896_v39  ;;  %v977_v46 = vmul.f32 %v1667_v41, %v965_v26  ;;  %vm983_vm4 = vweird.f32 %v1667_v41 }
 0x2f2   :  { %v971_v1 = vmul.f32 %v1665_v22, %v970_v56  ;;  %vm984_vm8 = vmor %vm982_vm7, %vm983_vm4  ;;  %vm1252_vm7 = vcmask 0  }
 0x2f3   :  { %v901_v48 = vsel %vm900_vm1, %v1663_v20, %v897_v44  ;;  %v978_v50 = vmul.f32 %v1667_v41, %v977_v46 }
 0x2f4   :  { %v904_v49 = vrot.slane %v901_v48, 7  ;;  %v975_v6 = vsel %vm974_vm10, %v1665_v22, %v971_v1 }
 0x2f5   :  { %v979_v58 = vmul.f32 0.5, %v978_v50 }
 0x2f6   :  { %v905_v33 = vsel %vm453_vm5, %v891_v52, %v904_v49  ;;  %v1190_v49 = vpop.xlane.xlu1 %1189 }
 0x2f7   :  { %v907_v29 = vmul.f32 %v905_v33, %v172_v42  ;;  %v980_v51 = vsub.f32 1.5, %v979_v58  ;;  %v1191_v52 = vmax.f32 %v1190_v49, 1e-24 }
 0x2f9   :  { %v909_v59 = vperm.slane %v907_v29, 0  ;;  %v910_v61 = vperm.slane %v907_v29, 1  ;;  %v981_v0 = vmul.f32 %v1667_v41, %v980_v51  ;;  %1668 = vrsqrt.f32 %v1191_v52 }
 0x2fa   :  { %vm1198_vm15 = vweird.f32 %v1191_v52 }
 0x2fb   :  { %v914_v55 = vmul.f32 %v910_v61, %v2128_v16  ;;  %v985_v2 = vsel %vm984_vm8, %v1667_v41, %v981_v0  ;;  %v913_v3 = vmul.f32 %v909_v59, %v2119_v5  ;;  %v922_v21 = vmul.f32 %v910_v61, %v2110_v60 }
 0x2fc   :  { %v988_v4 = vrot.slane %v985_v2, 7  ;;  %v921_v20 = vmul.f32 %v909_v59, %v2106_v57 }
 0x2fd   :  { %v917_v62 = vrot.slane %v914_v55, 7 }
 0x2fe   :  { %v989_v8 = vsel %vm453_vm5, %v975_v6, %v988_v4  ;;  %v1225_v50 = vpop.xlane.xlu1 %1224 }
 0x2ff   :  { %v918_v7 = vsel %vm453_vm5, %v913_v3, %v917_v62  ;;  %v991_v12 = vmul.f32 %v989_v8, %v172_v42  ;;  %v1226_v33 = vmax.f32 %v1225_v50, 1e-24  ;;  %v1669_v58 = vpop.eup %1668 }
 0x300   :  { %v920_v11 = vsub.f32 %v174_v47, %v918_v7  ;;  %v1193_v51 = vmul.f32 %v1669_v58, %v1191_v52  ;;  %vm1199_vm13 = vweird.f32 %v1669_v58 }
 0x301   :  { %v993_v13 = vperm.slane %v991_v12, 0  ;;  %v994_v14 = vperm.slane %v991_v12, 1  ;;  %1670 = vrsqrt.f32 %v1226_v33  ;;  %vm1200_vm0 = vmor %vm1198_vm15, %vm1199_vm13  ;;  %vm1233_vm4 = vweird.f32 %v1226_v33 }
 0x302   :  { %v925_v15 = vperm.slane %v920_v11, 1  ;;  %v924_v5 = vperm.slane %v920_v11, 0  ;;  %v1194_v55 = vmul.f32 %v1669_v58, %v1193_v51 }
 0x303   :  { %v998_v16 = vmul.f32 %v994_v14, %v2138_v40  ;;  %v997_v10 = vmul.f32 %v993_v13, %v2131_v9  ;;  %v1006_v23 = vmul.f32 %v994_v14, %v2123_v18  ;;  %v1005_v27 = vmul.f32 %v993_v13, %v2113_v63 }
 0x304   :  { %v929_v22 = vadd.f32 %v925_v15, %v922_v21  ;;  %v928_v26 = vadd.f32 %v924_v5, %v921_v20  ;;  %v1195_v6 = vmul.f32 0.5, %v1194_v55 }
 0x305   :  { %v1001_v32 = vrot.slane %v998_v16, 7 }
 0x306   :  { %v931_v9 = vmax.f32 %v929_v22, 0.0  ;;  %v930_v34 = vmax.f32 %v928_v26, 0.0  ;;  %v1196_v13 = vsub.f32 1.5, %v1195_v6 }
 0x307   :  { %v1002_v17 = vsel %vm453_vm5, %v997_v10, %v1001_v32  ;;  %v1671_v29 = vpop.eup %1670 }
 0x308   :  { %v1004_v19 = vsub.f32 %v174_v47, %v1002_v17  ;;  %v1228_v0 = vmul.f32 %v1671_v29, %v1226_v33  ;;  %v1197_v5 = vmul.f32 %v1669_v58, %v1196_v13  ;;  %vm1234_vm1 = vweird.f32 %v1671_v29 }
 0x309   :  { %vm1235_vm6 = vmor %vm1233_vm4, %vm1234_vm1 }
 0x30a   :  { %v1009_v24 = vperm.slane %v1004_v19, 1  ;;  %v1008_v40 = vperm.slane %v1004_v19, 0  ;;  %v1229_v3 = vmul.f32 %v1671_v29, %v1228_v0 }
 0x30c   :  { %v1013_v28 = vadd.f32 %v1009_v24, %v1006_v23  ;;  %v1012_v30 = vadd.f32 %v1008_v40, %v1005_v27  ;;  %v1230_v8 = vmul.f32 0.5, %v1229_v3  ;;  %v1201_v24 = vsel %vm1200_vm0, %v1669_v58, %v1197_v5 }
 0x30e   :  { %v1015_v31 = vmax.f32 %v1013_v28, 0.0  ;;  %v1014_v35 = vmax.f32 %v1012_v30, 0.0  ;;  %v1231_v16 = vsub.f32 1.5, %v1230_v8 }
 0x310   :  { %v1016_v60 = vpack.c.bf16 %v1014_v35, %v930_v34  ;;  %v1017_v36 = vpack.c.bf16 %v1015_v31, %v931_v9  ;;  %v1232_v20 = vmul.f32 %v1671_v29, %v1231_v16 }
 0x312   :  { %1154 = vmatmul.bf16.vlgmr.msrb.gmra.mxu3 %v1016_v60  ;;  %1168 = vmatmul.bf16.vlgmr.msra.gmra.mxu0 %v1017_v36  ;;  %v1236_v28 = vsel %vm1235_vm6, %v1671_v29, %v1232_v20 }
 0x38f   :  { %v1169_v57 = vpop.f32.mrf.mxu0 }
 0x395   :  { %v1155_v38 = vpop.f32.mrf.mxu3 }
 0x396   :  { %v1156_v39 = vadd.f32 %v1155_v38, %v175_v37 }
 0x397   :  { %v1171_v45 = vpop.f32.mrf.mxu0 }
 0x398   :  { %v1170_v18 = vadd.f32 %v1169_v57, %v1156_v39 }
 0x39a   :  { %v1202_v41 = vmul.f32 %v1170_v18, %v2098_v54  ;;  %v1174_v43 = vmul.f32 %v1170_v18, %v1170_v18 }
 0x39c   :  { %1203 = vadd.xlane.f32.xlu2 %v1202_v41  ;;  %1175 = vadd.xlane.f32.xlu0 %v1174_v43 }
 0x39d   :  { %v1157_v63 = vpop.f32.mrf.mxu3 }
 0x39e   :  { %v1158_v44 = vadd.f32 %v1157_v63, %v175_v37 }
 0x3a0   :  { %v1172_v46 = vadd.f32 %v1171_v45, %v1158_v44 }
 0x3a2   :  { %v1237_v48 = vmul.f32 %v1172_v46, %v2096_v53  ;;  %v1209_v42 = vmul.f32 %v1172_v46, %v1172_v46 }
 0x3a4   :  { %1238 = vadd.xlane.f32.xlu2 %v1237_v48  ;;  %1210 = vadd.xlane.f32.xlu0 %v1209_v42 }
 0x40f   :  { %v1176_v56 = vpop.xlane.xlu0 %1175  ;;  %v1204_v62 = vpop.xlane.xlu2 %1203 }
 0x410   :  { %v1177_v54 = vmax.f32 %v1176_v56, 1e-24  ;;  %v1205_v32 = vmul.f32 2.0, %v1204_v62 }
 0x412   :  { %1672 = vrsqrt.f32 %v1177_v54  ;;  %vm1184_vm11 = vweird.f32 %v1177_v54 }
 0x417   :  { %v1211_v59 = vpop.xlane.xlu0 %1210  ;;  %v1239_v21 = vpop.xlane.xlu2 %1238 }
 0x418   :  { %v1673_v61 = vpop.eup %1672  ;;  %v1212_v1 = vmax.f32 %v1211_v59, 1e-24  ;;  %v1240_v23 = vmul.f32 2.0, %v1239_v21 }
 0x419   :  { %v1179_v53 = vmul.f32 %v1673_v61, %v1177_v54  ;;  %vm1185_vm5 = vweird.f32 %v1673_v61 }
 0x41a   :  { %1674 = vrsqrt.f32 %v1212_v1  ;;  %vm1186_vm12 = vmor %vm1184_vm11, %vm1185_vm5  ;;  %vm1219_vm2 = vweird.f32 %v1212_v1 }
 0x41b   :  { %v1180_v2 = vmul.f32 %v1673_v61, %v1179_v53 }
 0x41d   :  { %v1181_v4 = vmul.f32 0.5, %v1180_v2 }
 0x41f   :  { %v1182_v47 = vsub.f32 1.5, %v1181_v4 }
 0x420   :  { %v1675_v7 = vpop.eup %1674 }
 0x421   :  { %v1183_v12 = vmul.f32 %v1673_v61, %v1182_v47  ;;  %v1214_v11 = vmul.f32 %v1675_v7, %v1212_v1  ;;  %vm1220_vm14 = vweird.f32 %v1675_v7 }
 0x422   :  { %vm1221_vm3 = vmor %vm1219_vm2, %vm1220_vm14 }
 0x423   :  { %v1215_v14 = vmul.f32 %v1675_v7, %v1214_v11  ;;  %v1187_v15 = vsel %vm1186_vm12, %v1673_v61, %v1183_v12 }
 0x424   :  { %v1206_v19 = vmul.f32 %v1205_v32, %v1187_v15 }
 0x425   :  { %v1216_v10 = vmul.f32 0.5, %v1215_v14 }
 0x426   :  { %v1207_v27 = vmul.f32 %v1206_v19, %v1201_v24 }
 0x427   :  { %v1217_v17 = vsub.f32 1.5, %v1216_v10 }
 0x428   :  { %v1208_v9 = vsub.f32 2.0, %v1207_v27 }
 0x429   :  { %v1218_v22 = vmul.f32 %v1675_v7, %v1217_v17 }
 0x42b   :  { %v1222_v26 = vsel %vm1221_vm3, %v1675_v7, %v1218_v22 }
 0x42c   :  { %v1241_v40 = vmul.f32 %v1240_v23, %v1222_v26 }
 0x42e   :  { %v1242_v30 = vmul.f32 %v1241_v40, %v1236_v28 }
 0x430   :  { %v1243_v31 = vsub.f32 2.0, %v1242_v30 }
 0x432   :  { %v1244_v34 = vadd.f32 %v1243_v31, %v1208_v9 }
 0x434   :  { %v1245_v35 = vrot.slane %v1244_v34, 4 }
 0x436   :  { %v1246_v60 = vadd.f32 %v1245_v35, %v1244_v34 }
 0x438   :  { %v1247_v36 = vrot.slane %v1246_v60, 2 }
 0x43a   :  { %v1248_v37 = vadd.f32 %v1247_v36, %v1246_v60 }
 0x43c   :  { %v1249_v57 = vrot.slane %v1248_v37, 1 }
 0x43e   :  { %v1250_v38 = vadd.f32 %v1249_v57, %v1248_v37 }
 0x440   :  { %v1251_v39 = vmul.f32 %v1250_v38, %v2031_v25 }
 0x442   :  { %1253 = vst.msk [vmem:[#allocation17] sm:$0x1] %vm1252_vm7, %v1251_v39 }
 0x443   :  { %1264 = dma.vmem_to_hbm [thread:$0]  %s1260_s8, 16, %s1262_s30, [#allocation4]  }
 0x444   :  { %1926 = dma.done.wait [#allocation4], 16  }
 0x445   :  { %1927 = vsyncadd [#allocation4], 4294967280 }
 0x446   :  { %1269 = vsyncpa [#allocation3], 1 }
 0x447   :  { %1270 = vsyncpa [#allocation6], 1 }
 0x448   :  { %1271 = vsyncpa [#allocation9], 1 }
 0x449   :  { %1272 = vsyncpa [#allocation12], 1 }
 0x44a   :  { %1273 = vsyncpa [#allocation15], 1 }
 0x44b   :  { %1274 = vsyncpa [#allocation4], 1 }

</bundles_post_ra>
